<compile_context>
chip_gen: v7x
topology: tpu7x:2x2x1
jax: 0.10.0
libtpu: 0.0.40
codegen_flags: <defaults>
</compile_context>

<pallas_src>
import functools

import jax
import jax.numpy as jnp
from jax import lax
from jax.experimental import pallas as pl
from jax.experimental.pallas import tpu as pltpu

_VMEM_LIMIT = 56 * 1024 * 1024


# ---------------------------------------------------------------------------
# Kernels
# ---------------------------------------------------------------------------
def _conv_act_stats_kernel(x_ref, w_ref, b_ref, y_ref, s_ref, q_ref,
                           s_run, q_run, *, tap_fuse, pack, alpha, act):
    """Valid 3x3 conv (stride 1) + bias + activation for one row-chunk of one
    image, plus per-channel sum / sum-of-squares for this (image, chunk).

      x_ref : (1, H, Cin, W)     whole input image (resident across chunks)
      w_ref : fused weights      (Cout,9*Cin) | (3,Cout,3*Cin) | (3,3,Cout,Cin)
      b_ref : (Cout, 1)
      y_ref : (1, TH, Cout, Wo)  activation rows of this chunk
      s_ref : (1, 1, Cout, 1)    per-(image, chunk) sum of activations
      q_ref : (1, 1, Cout, 1)    per-(image, chunk) sum of squares
      s_run/q_run : (Cout, Wo)   VMEM running accumulators (stats reductions
                                 hoisted out of the row loop)

    `pack` output rows per MXU call (lane-dense N); `tap_fuse` folds 3 or 9
    conv taps into the contraction (larger K for the shallow layers).
    """
    th = y_ref.shape[1]
    cout = y_ref.shape[2]
    wo = y_ref.shape[3]
    w_in = x_ref.shape[3]
    n_groups = th // pack
    r_base = pl.program_id(1) * th
    seg_w = wo if pack == 1 else w_in           # lane width of one packed row

    s_run[...] = jnp.zeros_like(s_run)
    q_run[...] = jnp.zeros_like(q_run)

    def group_body(g, carry):
        r0 = r_base + g * pack                  # first output row (image coords)
        lr0 = g * pack                          # first output row (chunk coords)

        # Each needed input row is loaded exactly once per group.
        rows = [x_ref[0, r0 + t] for t in range(pack + 2)]
        if pack == 1:
            def tap_slab(dy, dx):
                return rows[dy][:, dx:dx + wo]                  # (Cin, Wo)
        else:
            # Lane-concat `pack` rows per dy; dx taps via cheap lane rolls
            # (per-segment tail lanes are garbage and never read back).
            packed = [jnp.concatenate(rows[dy:dy + pack], axis=-1)
                      for dy in range(3)]                       # (Cin, pack*W)
            def tap_slab(dy, dx):
                if dx == 0:
                    return packed[dy]
                return jnp.roll(packed[dy], -dx, axis=-1)

        if tap_fuse == 9:
            slab = jnp.concatenate(
                [tap_slab(dy, dx) for dy in range(3) for dx in range(3)],
                axis=0)                                         # (9*Cin, N)
            acc = jnp.dot(w_ref[...], slab,
                          preferred_element_type=jnp.float32)
        elif tap_fuse == 3:
            acc = None
            for dy in range(3):
                slab = jnp.concatenate(
                    [tap_slab(dy, dx) for dx in range(3)], axis=0)  # (3*Cin, N)
                t = jnp.dot(w_ref[dy], slab,
                            preferred_element_type=jnp.float32)
                acc = t if acc is None else acc + t
        else:
            acc = None
            for dy in range(3):
                for dx in range(3):
                    t = jnp.dot(w_ref[dy, dx], tap_slab(dy, dx),
                                preferred_element_type=jnp.float32)
                    acc = t if acc is None else acc + t

        acc = acc + b_ref[...]
        if act == "prelu":
            acc = jnp.where(acc > 0, acc, alpha * acc)
        else:                                                   # sigmoid
            acc = 1.0 / (1.0 + jnp.exp(-acc))

        for pp in range(pack):
            seg = acc[:, pp * seg_w:pp * seg_w + wo]            # valid lanes
            y_ref[0, lr0 + pp] = seg
            s_run[...] += seg
            q_run[...] += seg * seg
        return carry

    lax.fori_loop(0, n_groups, group_body, 0)

    # Single cross-lane reduction per grid step (hoisted out of the row loop).
    s_ref[0, 0] = jnp.sum(s_run[...], axis=1, keepdims=True)
    q_ref[0, 0] = jnp.sum(q_run[...], axis=1, keepdims=True)


def _bn_pool_kernel(y_ref, sc_ref, sh_ref, d_ref, o_ref):
    """BatchNorm affine (x*scale + shift) fused with 2x2 / stride-2 max-pool
    for one image.  Rows are paired by index; the W direction takes the max
    with a one-lane roll and compacts even lanes with a 0/1 selection matmul
    (no strided lane access, no extra HBM pass)."""
    hp = o_ref.shape[1]
    c = y_ref.shape[2]
    wo = y_ref.shape[3]
    scb = pl.broadcast_to(sc_ref[...], (c, wo))
    shb = pl.broadcast_to(sh_ref[...], (c, wo))
    dsel = d_ref[...]

    def body(r, carry):
        v0 = y_ref[0, 2 * r] * scb + shb
        v1 = y_ref[0, 2 * r + 1] * scb + shb
        m = jnp.maximum(v0, v1)
        m = jnp.maximum(m, jnp.roll(m, -1, axis=-1))            # pair max
        o_ref[0, r] = jnp.dot(m, dsel, preferred_element_type=jnp.float32)
        return carry

    lax.fori_loop(0, hp, body, 0)


# ---------------------------------------------------------------------------
# Wrappers around pallas_call
# ---------------------------------------------------------------------------
def _conv_layer(x, wf, b, *, tap_fuse, pack, th, alpha, act):
    n, h, cin, w_in = x.shape
    cout = b.shape[0]
    ho, wo = h - 2, w_in - 2
    assert ho % th == 0 and th % pack == 0
    nchunks = ho // th

    if tap_fuse == 9:
        w_spec = pl.BlockSpec(wf.shape, lambda i, j: (0, 0))
    elif tap_fuse == 3:
        w_spec = pl.BlockSpec(wf.shape, lambda i, j: (0, 0, 0))
    else:
        w_spec = pl.BlockSpec(wf.shape, lambda i, j: (0, 0, 0, 0))

    kernel = functools.partial(_conv_act_stats_kernel, tap_fuse=tap_fuse,
                               pack=pack, alpha=float(alpha), act=act)
    return pl.pallas_call(
        kernel,
        out_shape=(
            jax.ShapeDtypeStruct((n, ho, cout, wo), jnp.float32),
            jax.ShapeDtypeStruct((n, nchunks, cout, 1), jnp.float32),
            jax.ShapeDtypeStruct((n, nchunks, cout, 1), jnp.float32),
        ),
        grid=(n, nchunks),
        in_specs=[
            pl.BlockSpec((1, h, cin, w_in), lambda i, j: (i, 0, 0, 0)),
            w_spec,
            pl.BlockSpec((cout, 1), lambda i, j: (0, 0)),
        ],
        out_specs=(
            pl.BlockSpec((1, th, cout, wo), lambda i, j: (i, j, 0, 0)),
            pl.BlockSpec((1, 1, cout, 1), lambda i, j: (i, j, 0, 0)),
            pl.BlockSpec((1, 1, cout, 1), lambda i, j: (i, j, 0, 0)),
        ),
        scratch_shapes=[pltpu.VMEM((cout, wo), jnp.float32),
                        pltpu.VMEM((cout, wo), jnp.float32)],
        compiler_params=pltpu.CompilerParams(
            dimension_semantics=("parallel", "parallel"),
            vmem_limit_bytes=_VMEM_LIMIT,
        ),
    )(x, wf, b)


def _bn_maxpool(y, s_parts, q_parts, gamma, beta, eps=1e-5):
    n, ho, c, wo = y.shape
    hp, wp = ho // 2, wo // 2

    # Fold batch statistics into a per-channel affine (glue math).
    cnt = float(n * ho * wo)
    s = jnp.sum(s_parts, axis=(0, 1))[:, 0]
    q = jnp.sum(q_parts, axis=(0, 1))[:, 0]
    mean = s / cnt
    var = jnp.maximum(q / cnt - mean * mean, 0.0)
    inv = gamma / jnp.sqrt(var + eps)
    scale = inv.reshape(c, 1)
    shift = (beta - mean * inv).reshape(c, 1)

    # 0/1 matrix selecting every second lane (W-subsample of the pool).
    dsel = (jnp.arange(wo)[:, None] == 2 * jnp.arange(wp)[None, :]
            ).astype(jnp.float32)

    return pl.pallas_call(
        _bn_pool_kernel,
        out_shape=jax.ShapeDtypeStruct((n, hp, c, wp), jnp.float32),
        grid=(n,),
        in_specs=[
            pl.BlockSpec((1, 2 * hp, c, wo), lambda i: (i, 0, 0, 0)),
            pl.BlockSpec((c, 1), lambda i: (0, 0)),
            pl.BlockSpec((c, 1), lambda i: (0, 0)),
            pl.BlockSpec((wo, wp), lambda i: (0, 0)),
        ],
        out_specs=pl.BlockSpec((1, hp, c, wp), lambda i: (i, 0, 0, 0)),
        compiler_params=pltpu.CompilerParams(
            dimension_semantics=("parallel",),
            vmem_limit_bytes=_VMEM_LIMIT,
        ),
    )(y, scale, shift, dsel)


# ---------------------------------------------------------------------------
# Model glue
# ---------------------------------------------------------------------------
def _nearest_resize_hw(x, out_h, out_w):
    # TODO(synk): F.interpolate default (nearest) is a pure gather; done in
    # plain JAX glue rather than inside a Pallas kernel.
    _, h, _, wd = x.shape
    ih = (jnp.arange(out_h) * h) // out_h
    iw = (jnp.arange(out_w) * wd) // out_w
    return x[:, ih][:, :, :, iw]


def _fuse_weights(w, tap_fuse, cin_pad=None):
    """(3,3,Cout,Cin) conv weight -> layout matching the kernel's tap fusion."""
    _, _, cout, cin = w.shape
    if cin_pad is not None and cin_pad > cin:
        w = jnp.pad(w, ((0, 0), (0, 0), (0, 0), (0, cin_pad - cin)))
        cin = cin_pad
    if tap_fuse == 9:
        return jnp.transpose(w, (2, 0, 1, 3)).reshape(cout, 9 * cin)
    if tap_fuse == 3:
        return jnp.transpose(w, (0, 2, 1, 3)).reshape(3, cout, 3 * cin)
    return w


# (tap_fuse, rows packed per matmul, row-chunk).  `th` divides the conv output
# height exactly and `pack` divides `th`, so no block is ever ragged.
_LAYER_CFG = {
    "down1": dict(tap_fuse=9, pack=2, th=254),   # Cin 6->8 : K=72,  N=512
    "down2": dict(tap_fuse=3, pack=1, th=25),    # K=192, N=125
    "down3": dict(tap_fuse=1, pack=2, th=30),    # K=256, N=124
    "down4": dict(tap_fuse=1, pack=4, th=28),    # K=512, N=120
}
_OUT_CFG = dict(tap_fuse=3, pack=7, th=14)       # K=192, N=112


def discriminator_forward(params, img_a, img_b):
    # NCHW -> (N, H, C, W): width on lanes, channels on sublanes.
    a = jnp.transpose(img_a.astype(jnp.float32), (0, 2, 1, 3))
    b = jnp.transpose(img_b.astype(jnp.float32), (0, 2, 1, 3))
    a = _nearest_resize_hw(a, 256, 256)
    b = _nearest_resize_hw(b, 256, 256)
    x = jnp.concatenate([a, b], axis=2)                  # channel concat -> 6
    x = jnp.pad(x, ((0, 0), (0, 0), (0, 2), (0, 0)))     # Cin 6 -> 8 (aligned K)

    for name in ["down1", "down2", "down3", "down4"]:
        prm = params[name]
        cfg = _LAYER_CFG[name]
        cin_pad = 8 if name == "down1" else None
        wf = _fuse_weights(prm["w"], cfg["tap_fuse"], cin_pad)
        y, s, q = _conv_layer(x, wf, prm["b"], tap_fuse=cfg["tap_fuse"],
                              pack=cfg["pack"], th=cfg["th"],
                              alpha=prm["alpha"], act="prelu")
        x = _bn_maxpool(y, s, q, prm["gamma"], prm["beta"])

    prm = params["conv_out"]
    xp = jnp.pad(x, ((0, 0), (1, 1), (0, 0), (1, 1)))    # padding=1 ('same')
    wf = _fuse_weights(prm["w"], _OUT_CFG["tap_fuse"])
    y, _, _ = _conv_layer(xp, wf, prm["b"], tap_fuse=_OUT_CFG["tap_fuse"],
                          pack=_OUT_CFG["pack"], th=_OUT_CFG["th"],
                          alpha=0.0, act="sigmoid")
    # (N, H, C, W) -> NCHW : (N, 72, 14, 14)
    return jnp.transpose(y, (0, 2, 1, 3))


def init_params(key):
    params = {}
    specs = [("down1", 6, 64), ("down2", 64, 256),
             ("down3", 256, 512), ("down4", 512, 64)]
    keys = jax.random.split(key, len(specs) + 1)
    for k, (name, cin, cout) in zip(keys[:-1], specs):
        kw, kb, kg, kbe = jax.random.split(k, 4)
        params[name] = dict(
            # conv weight stored as (kh, kw, Cout, Cin)
            w=jax.random.normal(kw, (3, 3, cout, cin), jnp.float32)
              / float(9 * cin) ** 0.5,
            b=0.01 * jax.random.normal(kb, (cout, 1), jnp.float32),
            alpha=0.25,                              # nn.PReLU() default init
            gamma=1.0 + 0.1 * jax.random.normal(kg, (cout,), jnp.float32),
            beta=0.05 * jax.random.normal(kbe, (cout,), jnp.float32),
        )
    kw, kb = jax.random.split(keys[-1])
    params["conv_out"] = dict(
        w=jax.random.normal(kw, (3, 3, 72, 64), jnp.float32)
          / float(9 * 64) ** 0.5,
        b=0.01 * jax.random.normal(kb, (72, 1), jnp.float32),
    )
    return params


if __name__ == "__main__":
    key = jax.random.PRNGKey(0)
    kp, ka, kb = jax.random.split(key, 3)
    params = init_params(kp)
    img_a = jax.random.normal(ka, (2, 3, 16, 16), jnp.float32)  # NCHW
    img_b = jax.random.normal(kb, (2, 3, 16, 16), jnp.float32)
    out = discriminator_forward(params, img_a, img_b)
    out = jax.block_until_ready(out)
    assert out.shape == (2, 72, 14, 14), out.shape
    assert bool(jnp.all(jnp.isfinite(out)))
    print("KERNEL_OK")
</pallas_src>

<mosaic_0001>
module attributes {stable_mosaic.version = 11 : i64} {
  func.func @_conv_act_stats_kernel(%arg0: i32, %arg1: i32, %arg2: memref<1x256x8x256xf32, #tpu.memory_space<vmem>>, %arg3: memref<64x72xf32, #tpu.memory_space<vmem>>, %arg4: memref<64x1xf32, #tpu.memory_space<vmem>>, %arg5: memref<1x254x64x254xf32, #tpu.memory_space<vmem>>, %arg6: memref<1x1x64x1xf32, #tpu.memory_space<vmem>>, %arg7: memref<1x1x64x1xf32, #tpu.memory_space<vmem>>, %arg8: memref<64x254xf32, #tpu.memory_space<vmem>>, %arg9: memref<64x254xf32, #tpu.memory_space<vmem>>) attributes {dimension_semantics = [#tpu.dimension_semantics<parallel>, #tpu.dimension_semantics<parallel>], iteration_bounds = array<i64: 2, 1>, scalar_prefetch = 0 : i64, scratch_operands = 2 : i64, tpu.core_type = #tpu.core_type<tc>, window_params = [{transform_indices = @transform_0, window_bounds = array<i64: 1, 256, 8, 256>}, {pipeline_mode = #tpu.pipeline_mode<synchronous>, transform_indices = @transform_1, window_bounds = array<i64: 64, 72>}, {pipeline_mode = #tpu.pipeline_mode<synchronous>, transform_indices = @transform_2, window_bounds = array<i64: 64, 1>}, {transform_indices = @transform_3, window_bounds = array<i64: 1, 254, 64, 254>}, {transform_indices = @transform_4, window_bounds = array<i64: 1, 1, 64, 1>}, {transform_indices = @transform_5, window_bounds = array<i64: 1, 1, 64, 1>}]} {
    %c254_i32 = arith.constant 254 : i32
    %0 = arith.muli %arg1, %c254_i32 : i32
    %cst = arith.constant 0.000000e+00 : f32
    %1 = vector.broadcast %cst : f32 to vector<64x254xf32>
    %c0 = arith.constant 0 : index
    %c0_0 = arith.constant 0 : index
    %2 = vector.load %arg8[%c0, %c0_0] : memref<64x254xf32, #tpu.memory_space<vmem>>, vector<64x254xf32>
    tpu.vector_store %arg8[%c0, %c0_0], %1 {strides = array<i32>} : memref<64x254xf32, #tpu.memory_space<vmem>>, vector<64x254xf32>,
    %cst_1 = arith.constant 0.000000e+00 : f32
    %3 = vector.broadcast %cst_1 : f32 to vector<64x254xf32>
    %c0_2 = arith.constant 0 : index
    %c0_3 = arith.constant 0 : index
    %4 = vector.load %arg9[%c0_2, %c0_3] : memref<64x254xf32, #tpu.memory_space<vmem>>, vector<64x254xf32>
    tpu.vector_store %arg9[%c0_2, %c0_3], %3 {strides = array<i32>} : memref<64x254xf32, #tpu.memory_space<vmem>>, vector<64x254xf32>,
    %c0_i32 = arith.constant 0 : i32
    %c127_i32 = arith.constant 127 : i32
    %5 = arith.addi %c0_i32, %c127_i32 : i32
    %c1_i32 = arith.constant 1 : i32
    scf.for %arg10 = %c0_i32 to %5 step %c1_i32  : i32 {
      %c2_i32 = arith.constant 2 : i32
      %18 = arith.muli %arg10, %c2_i32 : i32
      %19 = arith.addi %0, %18 : i32
      %c2_i32_19 = arith.constant 2 : i32
      %20 = arith.muli %arg10, %c2_i32_19 : i32
      %c0_i32_20 = arith.constant 0 : i32
      %21 = arith.addi %19, %c0_i32_20 : i32
      %c0_21 = arith.constant 0 : index
      %22 = arith.index_cast %21 : i32 to index
      %c0_22 = arith.constant 0 : index
      %c0_23 = arith.constant 0 : index
      %23 = vector.load %arg2[%c0_21, %22, %c0_22, %c0_23] : memref<1x256x8x256xf32, #tpu.memory_space<vmem>>, vector<1x1x8x256xf32>
      %24 = vector.shape_cast %23 : vector<1x1x8x256xf32> to vector<8x256xf32>
      %c1_i32_24 = arith.constant 1 : i32
      %25 = arith.addi %19, %c1_i32_24 : i32
      %c0_25 = arith.constant 0 : index
      %26 = arith.index_cast %25 : i32 to index
      %c0_26 = arith.constant 0 : index
      %c0_27 = arith.constant 0 : index
      %27 = vector.load %arg2[%c0_25, %26, %c0_26, %c0_27] : memref<1x256x8x256xf32, #tpu.memory_space<vmem>>, vector<1x1x8x256xf32>
      %28 = vector.shape_cast %27 : vector<1x1x8x256xf32> to vector<8x256xf32>
      %c2_i32_28 = arith.constant 2 : i32
      %29 = arith.addi %19, %c2_i32_28 : i32
      %c0_29 = arith.constant 0 : index
      %30 = arith.index_cast %29 : i32 to index
      %c0_30 = arith.constant 0 : index
      %c0_31 = arith.constant 0 : index
      %31 = vector.load %arg2[%c0_29, %30, %c0_30, %c0_31] : memref<1x256x8x256xf32, #tpu.memory_space<vmem>>, vector<1x1x8x256xf32>
      %32 = vector.shape_cast %31 : vector<1x1x8x256xf32> to vector<8x256xf32>
      %c3_i32 = arith.constant 3 : i32
      %33 = arith.addi %19, %c3_i32 : i32
      %c0_32 = arith.constant 0 : index
      %34 = arith.index_cast %33 : i32 to index
      %c0_33 = arith.constant 0 : index
      %c0_34 = arith.constant 0 : index
      %35 = vector.load %arg2[%c0_32, %34, %c0_33, %c0_34] : memref<1x256x8x256xf32, #tpu.memory_space<vmem>>, vector<1x1x8x256xf32>
      %36 = vector.shape_cast %35 : vector<1x1x8x256xf32> to vector<8x256xf32>
      %37 = tpu.concatenate %24, %28 in 1 : vector<8x256xf32>, vector<8x256xf32> -> vector<8x512xf32>
      %38 = tpu.concatenate %28, %32 in 1 : vector<8x256xf32>, vector<8x256xf32> -> vector<8x512xf32>
      %39 = tpu.concatenate %32, %36 in 1 : vector<8x256xf32>, vector<8x256xf32> -> vector<8x512xf32>
      %40 = vector.extract_strided_slice %37 {offsets = [0, 1], sizes = [8, 511], strides = [1, 1]} : vector<8x512xf32> to vector<8x511xf32>
      %41 = vector.extract_strided_slice %37 {offsets = [0, 0], sizes = [8, 1], strides = [1, 1]} : vector<8x512xf32> to vector<8x1xf32>
      %42 = tpu.concatenate %40, %41 in 1 : vector<8x511xf32>, vector<8x1xf32> -> vector<8x512xf32>
      %43 = vector.extract_strided_slice %37 {offsets = [0, 2], sizes = [8, 510], strides = [1, 1]} : vector<8x512xf32> to vector<8x510xf32>
      %44 = vector.extract_strided_slice %37 {offsets = [0, 0], sizes = [8, 2], strides = [1, 1]} : vector<8x512xf32> to vector<8x2xf32>
      %45 = tpu.concatenate %43, %44 in 1 : vector<8x510xf32>, vector<8x2xf32> -> vector<8x512xf32>
      %46 = vector.extract_strided_slice %38 {offsets = [0, 1], sizes = [8, 511], strides = [1, 1]} : vector<8x512xf32> to vector<8x511xf32>
      %47 = vector.extract_strided_slice %38 {offsets = [0, 0], sizes = [8, 1], strides = [1, 1]} : vector<8x512xf32> to vector<8x1xf32>
      %48 = tpu.concatenate %46, %47 in 1 : vector<8x511xf32>, vector<8x1xf32> -> vector<8x512xf32>
      %49 = vector.extract_strided_slice %38 {offsets = [0, 2], sizes = [8, 510], strides = [1, 1]} : vector<8x512xf32> to vector<8x510xf32>
      %50 = vector.extract_strided_slice %38 {offsets = [0, 0], sizes = [8, 2], strides = [1, 1]} : vector<8x512xf32> to vector<8x2xf32>
      %51 = tpu.concatenate %49, %50 in 1 : vector<8x510xf32>, vector<8x2xf32> -> vector<8x512xf32>
      %52 = vector.extract_strided_slice %39 {offsets = [0, 1], sizes = [8, 511], strides = [1, 1]} : vector<8x512xf32> to vector<8x511xf32>
      %53 = vector.extract_strided_slice %39 {offsets = [0, 0], sizes = [8, 1], strides = [1, 1]} : vector<8x512xf32> to vector<8x1xf32>
      %54 = tpu.concatenate %52, %53 in 1 : vector<8x511xf32>, vector<8x1xf32> -> vector<8x512xf32>
      %55 = vector.extract_strided_slice %39 {offsets = [0, 2], sizes = [8, 510], strides = [1, 1]} : vector<8x512xf32> to vector<8x510xf32>
      %56 = vector.extract_strided_slice %39 {offsets = [0, 0], sizes = [8, 2], strides = [1, 1]} : vector<8x512xf32> to vector<8x2xf32>
      %57 = tpu.concatenate %55, %56 in 1 : vector<8x510xf32>, vector<8x2xf32> -> vector<8x512xf32>
      %58 = tpu.concatenate %37, %42, %45, %38, %48, %51, %39, %54, %57 in 0 : vector<8x512xf32>, vector<8x512xf32>, vector<8x512xf32>, vector<8x512xf32>, vector<8x512xf32>, vector<8x512xf32>, vector<8x512xf32>, vector<8x512xf32>, vector<8x512xf32> -> vector<72x512xf32>
      %c0_35 = arith.constant 0 : index
      %c0_36 = arith.constant 0 : index
      %59 = vector.load %arg3[%c0_35, %c0_36] : memref<64x72xf32, #tpu.memory_space<vmem>>, vector<64x72xf32>
      %cst_37 = arith.constant dense<0.000000e+00> : vector<64x512xf32>
      %60 = tpu.matmul %59, %58, %cst_37 {dimension_numbers = #tpu.dot_dimension_numbers<[1], [0], [0], [1], [0, 0, 1, 1], [], []>} : vector<64x72xf32>, vector<72x512xf32>, vector<64x512xf32> -> vector<64x512xf32>
      %c0_38 = arith.constant 0 : index
      %c0_39 = arith.constant 0 : index
      %61 = vector.load %arg4[%c0_38, %c0_39] : memref<64x1xf32, #tpu.memory_space<vmem>>, vector<64x1xf32>
      %62 = vector.broadcast %61 : vector<64x1xf32> to vector<64x512xf32>
      %63 = arith.addf %60, %62 : vector<64x512xf32>
      %cst_40 = arith.constant 0.000000e+00 : f32
      %64 = vector.broadcast %cst_40 : f32 to vector<64x512xf32>
      %65 = arith.cmpf ogt, %63, %64 : vector<64x512xf32>
      %cst_41 = arith.constant 2.500000e-01 : f32
      %66 = vector.broadcast %cst_41 : f32 to vector<64x512xf32>
      %67 = arith.mulf %66, %63 : vector<64x512xf32>
      %68 = arith.select %65, %63, %67 : vector<64x512xi1>, vector<64x512xf32>
      %69 = vector.extract_strided_slice %68 {offsets = [0, 0], sizes = [64, 254], strides = [1, 1]} : vector<64x512xf32> to vector<64x254xf32>
      %c0_i32_42 = arith.constant 0 : i32
      %70 = arith.addi %20, %c0_i32_42 : i32
      %c0_43 = arith.constant 0 : index
      %71 = arith.index_cast %70 : i32 to index
      %c0_44 = arith.constant 0 : index
      %c0_45 = arith.constant 0 : index
      %72 = vector.load %arg5[%c0_43, %71, %c0_44, %c0_45] : memref<1x254x64x254xf32, #tpu.memory_space<vmem>>, vector<1x1x64x254xf32>
      %73 = vector.shape_cast %72 : vector<1x1x64x254xf32> to vector<64x254xf32>
      %74 = vector.shape_cast %69 : vector<64x254xf32> to vector<1x1x64x254xf32>
      tpu.vector_store %arg5[%c0_43, %71, %c0_44, %c0_45], %74 {strides = array<i32>} : memref<1x254x64x254xf32, #tpu.memory_space<vmem>>, vector<1x1x64x254xf32>,
      %c0_46 = arith.constant 0 : index
      %c0_47 = arith.constant 0 : index
      %75 = vector.load %arg8[%c0_46, %c0_47] : memref<64x254xf32, #tpu.memory_space<vmem>>, vector<64x254xf32>
      %76 = arith.addf %75, %69 : vector<64x254xf32>
      %c0_48 = arith.constant 0 : index
      %c0_49 = arith.constant 0 : index
      %77 = vector.load %arg8[%c0_48, %c0_49] : memref<64x254xf32, #tpu.memory_space<vmem>>, vector<64x254xf32>
      tpu.vector_store %arg8[%c0_48, %c0_49], %76 {strides = array<i32>} : memref<64x254xf32, #tpu.memory_space<vmem>>, vector<64x254xf32>,
      %c0_50 = arith.constant 0 : index
      %c0_51 = arith.constant 0 : index
      %78 = vector.load %arg9[%c0_50, %c0_51] : memref<64x254xf32, #tpu.memory_space<vmem>>, vector<64x254xf32>
      %79 = arith.mulf %69, %69 : vector<64x254xf32>
      %80 = arith.addf %78, %79 : vector<64x254xf32>
      %c0_52 = arith.constant 0 : index
      %c0_53 = arith.constant 0 : index
      %81 = vector.load %arg9[%c0_52, %c0_53] : memref<64x254xf32, #tpu.memory_space<vmem>>, vector<64x254xf32>
      tpu.vector_store %arg9[%c0_52, %c0_53], %80 {strides = array<i32>} : memref<64x254xf32, #tpu.memory_space<vmem>>, vector<64x254xf32>,
      %82 = vector.extract_strided_slice %68 {offsets = [0, 256], sizes = [64, 254], strides = [1, 1]} : vector<64x512xf32> to vector<64x254xf32>
      %c1_i32_54 = arith.constant 1 : i32
      %83 = arith.addi %20, %c1_i32_54 : i32
      %c0_55 = arith.constant 0 : index
      %84 = arith.index_cast %83 : i32 to index
      %c0_56 = arith.constant 0 : index
      %c0_57 = arith.constant 0 : index
      %85 = vector.load %arg5[%c0_55, %84, %c0_56, %c0_57] : memref<1x254x64x254xf32, #tpu.memory_space<vmem>>, vector<1x1x64x254xf32>
      %86 = vector.shape_cast %85 : vector<1x1x64x254xf32> to vector<64x254xf32>
      %87 = vector.shape_cast %82 : vector<64x254xf32> to vector<1x1x64x254xf32>
      tpu.vector_store %arg5[%c0_55, %84, %c0_56, %c0_57], %87 {strides = array<i32>} : memref<1x254x64x254xf32, #tpu.memory_space<vmem>>, vector<1x1x64x254xf32>,
      %c0_58 = arith.constant 0 : index
      %c0_59 = arith.constant 0 : index
      %88 = vector.load %arg8[%c0_58, %c0_59] : memref<64x254xf32, #tpu.memory_space<vmem>>, vector<64x254xf32>
      %89 = arith.addf %88, %82 : vector<64x254xf32>
      %c0_60 = arith.constant 0 : index
      %c0_61 = arith.constant 0 : index
      %90 = vector.load %arg8[%c0_60, %c0_61] : memref<64x254xf32, #tpu.memory_space<vmem>>, vector<64x254xf32>
      tpu.vector_store %arg8[%c0_60, %c0_61], %89 {strides = array<i32>} : memref<64x254xf32, #tpu.memory_space<vmem>>, vector<64x254xf32>,
      %c0_62 = arith.constant 0 : index
      %c0_63 = arith.constant 0 : index
      %91 = vector.load %arg9[%c0_62, %c0_63] : memref<64x254xf32, #tpu.memory_space<vmem>>, vector<64x254xf32>
      %92 = arith.mulf %82, %82 : vector<64x254xf32>
      %93 = arith.addf %91, %92 : vector<64x254xf32>
      %c0_64 = arith.constant 0 : index
      %c0_65 = arith.constant 0 : index
      %94 = vector.load %arg9[%c0_64, %c0_65] : memref<64x254xf32, #tpu.memory_space<vmem>>, vector<64x254xf32>
      tpu.vector_store %arg9[%c0_64, %c0_65], %93 {strides = array<i32>} : memref<64x254xf32, #tpu.memory_space<vmem>>, vector<64x254xf32>,
    }
    %c127_i32_4 = arith.constant 127 : i32
    %c0_5 = arith.constant 0 : index
    %c0_6 = arith.constant 0 : index
    %6 = vector.load %arg8[%c0_5, %c0_6] : memref<64x254xf32, #tpu.memory_space<vmem>>, vector<64x254xf32>
    %cst_7 = arith.constant dense<0.000000e+00> : vector<64xf32>
    %7 = vector.multi_reduction <add>, %6, %cst_7 [1] : vector<64x254xf32> to vector<64xf32>
    %8 = vector.shape_cast %7 : vector<64xf32> to vector<64x1xf32>
    %c0_8 = arith.constant 0 : index
    %c0_9 = arith.constant 0 : index
    %c0_10 = arith.constant 0 : index
    %c0_11 = arith.constant 0 : index
    %9 = vector.load %arg6[%c0_8, %c0_9, %c0_10, %c0_11] : memref<1x1x64x1xf32, #tpu.memory_space<vmem>>, vector<1x1x64x1xf32>
    %10 = vector.shape_cast %9 : vector<1x1x64x1xf32> to vector<64x1xf32>
    %11 = vector.shape_cast %8 : vector<64x1xf32> to vector<1x1x64x1xf32>
    tpu.vector_store %arg6[%c0_8, %c0_9, %c0_10, %c0_11], %11 {strides = array<i32>} : memref<1x1x64x1xf32, #tpu.memory_space<vmem>>, vector<1x1x64x1xf32>,
    %c0_12 = arith.constant 0 : index
    %c0_13 = arith.constant 0 : index
    %12 = vector.load %arg9[%c0_12, %c0_13] : memref<64x254xf32, #tpu.memory_space<vmem>>, vector<64x254xf32>
    %cst_14 = arith.constant dense<0.000000e+00> : vector<64xf32>
    %13 = vector.multi_reduction <add>, %12, %cst_14 [1] : vector<64x254xf32> to vector<64xf32>
    %14 = vector.shape_cast %13 : vector<64xf32> to vector<64x1xf32>
    %c0_15 = arith.constant 0 : index
    %c0_16 = arith.constant 0 : index
    %c0_17 = arith.constant 0 : index
    %c0_18 = arith.constant 0 : index
    %15 = vector.load %arg7[%c0_15, %c0_16, %c0_17, %c0_18] : memref<1x1x64x1xf32, #tpu.memory_space<vmem>>, vector<1x1x64x1xf32>
    %16 = vector.shape_cast %15 : vector<1x1x64x1xf32> to vector<64x1xf32>
    %17 = vector.shape_cast %14 : vector<64x1xf32> to vector<1x1x64x1xf32>
    tpu.vector_store %arg7[%c0_15, %c0_16, %c0_17, %c0_18], %17 {strides = array<i32>} : memref<1x1x64x1xf32, #tpu.memory_space<vmem>>, vector<1x1x64x1xf32>,
    return
  }
  func.func @transform_0(%arg0: i32, %arg1: i32) -> (i32, i32, i32, i32) {
    %c0_i32 = arith.constant 0 : i32
    %c0_i32_0 = arith.constant 0 : i32
    %c0_i32_1 = arith.constant 0 : i32
    %c0_i32_2 = arith.constant 0 : i32
    return %arg0, %c0_i32, %c0_i32_0, %c0_i32_1 : i32, i32, i32, i32
  }
  func.func @transform_1(%arg0: i32, %arg1: i32) -> (i32, i32) {
    %c0_i32 = arith.constant 0 : i32
    %c0_i32_0 = arith.constant 0 : i32
    %c0_i32_1 = arith.constant 0 : i32
    return %c0_i32, %c0_i32_0 : i32, i32
  }
  func.func @transform_2(%arg0: i32, %arg1: i32) -> (i32, i32) {
    %c0_i32 = arith.constant 0 : i32
    %c0_i32_0 = arith.constant 0 : i32
    %c0_i32_1 = arith.constant 0 : i32
    return %c0_i32, %c0_i32_0 : i32, i32
  }
  func.func @transform_3(%arg0: i32, %arg1: i32) -> (i32, i32, i32, i32) {
    %c0_i32 = arith.constant 0 : i32
    %c0_i32_0 = arith.constant 0 : i32
    %c0_i32_1 = arith.constant 0 : i32
    return %arg0, %arg1, %c0_i32, %c0_i32_0 : i32, i32, i32, i32
  }
  func.func @transform_4(%arg0: i32, %arg1: i32) -> (i32, i32, i32, i32) {
    %c0_i32 = arith.constant 0 : i32
    %c0_i32_0 = arith.constant 0 : i32
    %c0_i32_1 = arith.constant 0 : i32
    return %arg0, %arg1, %c0_i32, %c0_i32_0 : i32, i32, i32, i32
  }
  func.func @transform_5(%arg0: i32, %arg1: i32) -> (i32, i32, i32, i32) {
    %c0_i32 = arith.constant 0 : i32
    %c0_i32_0 = arith.constant 0 : i32
    %c0_i32_1 = arith.constant 0 : i32
    return %arg0, %arg1, %c0_i32, %c0_i32_0 : i32, i32, i32, i32
  }
}

</mosaic_0001>

<bundles_post_ra>
// kernel: tpu_custom_call.1
= control target key start
LH: loop header
LB: loop body
LE: loop exit
PB: predicated region body
PF: predicated region fallthrough
CT: control target
= control target key end

     0   :  { %s2534_s0 = inlined_call_operand.hbm [shape: f32[2,256,8,256], index: 0, kind: input, shape index: {}]   ;;  %s2535_s1 = inlined_call_operand.hbm [shape: f32[64,72], index: 1, kind: input, shape index: {}]   ;;  %s2536_s2 = inlined_call_operand.vmem [shape: f32[64,1], index: 2, kind: input, shape index: {}]   ;;  %s2537_s3 = inlined_call_operand.hbm [shape: f32[2,254,64,254], index: 3, kind: output, shape index: {0}]   ;;  %s2538_s4 = inlined_call_operand.vmem [shape: f32[2,1,64,1], index: 4, kind: output, shape index: {1}]   ;;  %s2539_s5 = inlined_call_operand.vmem [shape: f32[2,1,64,1], index: 5, kind: output, shape index: {2}]  }
   0x1   :  { %2544 = sst [smem:[#allocation13_spill]] %s2534_s0 }
   0x2   :  { %11 = vsyncpa [#allocation5], 0 }
   0x3   :  { %13 = vsyncpa [#allocation5 + $0x1], 0 }
   0x4   :  { %14 = vsyncpa [#allocation8], 0 }
   0x5   :  { %15 = vsyncpa [#allocation6], 0 }
   0x6   :  { %17 = vsyncpa [#allocation6 + $0x1], 0  ;;  %s1931_s18 = smov 0   ;;  %s1933_s19 = smov 0  }
   0x7   :  { %s1935_s20 = smov 0   ;;  %s1937_s21 = smov 0  }
   0x8   :  { %s1939_s22 = smov 0   ;;  %s1941_s23 = smov 0  }
   0x9 LB: > { %s1500_s24 = sadd.s32 4294967295, %s1881_s23   ;;  %s1501_s25 = sadd.s32 4294967294, %s1881_s23   ;;  %s1881_s23 = sphi %s1941_s23, %s23_s23   ;;  %s1877_s22 = sphi %s1939_s22, %s2565_s22   ;;  %s1873_s21 = sphi %s1937_s21, %s2564_s21   ;;  %s1869_s20 = sphi %s1935_s20, %s2563_s20   ;;  %s1865_s19 = sphi %s1933_s19, %s2562_s19   ;;  %s1861_s18 = sphi %s1931_s18, %s2561_s18  }
   0xa   : > { %p55_p0 = scmp.ne.s32.totalorder %s1865_s19, %s1861_s18  ;;  %p1965_p1 = scmp.eq.s32.totalorder %s1500_s24, 0 }
   0xb   : > { %p1969_p2 = scmp.eq.s32.totalorder %s1500_s24, 1  ;;  %p129_p3 = scmp.eq.s32.totalorder %s1501_s25, 1 }
   0xc   : > { %s2545_s26 = scalar_select %p1965_p1, 1, 0 }
   0xd   : > { %s2546_s27 = scalar_select %p1969_p2, 1, 0 }
   0xe   : > { %p1975_p4 = por %p1965_p1, %p55_p0  ;;  %p1502_p5 = scmp.ge.s32.totalorder %s1881_s23, 1 }
   0xf   : > { %p1980_p6 = por %p129_p3, %p55_p0  ;;  %p192_p7 = scmp.lt.s32.totalorder %s1881_s23, 3 }
  0x10   : > { %s2547_s28 = scalar_select %p1975_p4, 1, 0 }
  0x11   : > { %s2548_s29 = scalar_select %p1980_p6, 1, 0 }
  0x12   : > { %p1985_p8 = pnand %p1502_p5, %p192_p7  ;;  %s1887_s6 = smov [#allocation7]  }
  0x13   : > { %s204_s7 = sshll.u32 %s1887_s6, 4  ;;  %s35_s9 = sadd.s32 1, %s1877_s22  ;;  %s205_s7 = int_to_ptr.vmem [resolvable:$true] %s204_s7 }
  0x14   : > { %s2549_s30 = scalar_select %p1985_p8, 1, 0 }
  0x15   : > { %p1622_p9 = pneg %p1985_p8  ;;  %s1733_s12 = scalar_lea.hbm %s2535_s1, 1024 }
  0x16   : > { %p1734_p12 = scmp.ne.s32.totalorder %s2535_s1, %s1733_s12  ;;  %p1740_p5 = scmp.lt.u32.totalorder %s1733_s12, %s2535_s1 }
  0x17   : > { %p1994_p11 = pnand %p1622_p9, %p1965_p1 }
  0x19   : > { %p1735_p13 = pneg %p1994_p11 }
  0x1b   : > { %p1736_p0 = pnand %p1735_p13, %p1734_p12 }
  0x1d   : > { %p1737_p3 = pneg %p1736_p0 }
  0x1f   : > { %p1742_p7 = pnand %p1740_p5, %p1737_p3 }
  0x21   : > { %1745 = shalt.err (!%p1742_p7)
}
  0x22   : > { %s1746_s17 = scalar_lea.vmem %s205_s7, 1024  ;;  %p1754_p1 = scmp.lt.s32.totalorder %s205_s7, %s205_s7 }
  0x23   : > { %p1747_p9 = scmp.ne.s32.totalorder %s205_s7, %s1746_s17  ;;  %p1755_p4 = scmp.lt.s32.totalorder %s1746_s17, %s1746_s17 }
  0x25   : > { %p1749_p10 = pnand %p1747_p9, %p1735_p13  ;;  %p1756_p8 = por %p1755_p4, %p1754_p1 }
  0x27   : > { %p1750_p6 = pneg %p1749_p10 }
  0x29   : > { %p1757_p2 = pnand %p1756_p8, %p1750_p6 }
  0x2b   : > { %1760 = shalt.err (!%p1757_p2)
}
  0x2c   : > { %s1888_s24 = smov 128   ;;  %s1889_s25 = smov 8  }
  0x2d   : > { %1625 = dma.hbm_to_vmem [thread:$0]  (!%p1994_p11), %s2535_s1, 1024, %s205_s7, [#allocation8], %s1888_s24, %s1888_s24, %s1889_s25  }
  0x2e   : > { %p37_p1 = scmp.ge.s32.totalorder %s35_s9, 2  ;;  %s42_s11 = sadd.s32 1, %s1869_s20 }
  0x2f   : > { %p49_p2 = scmp.ne.s32.totalorder %s1869_s20, %s1865_s19  ;;  %p50_p4 = scmp.eq.s32.totalorder %s1881_s23, 0 }
  0x30   : > { %s2567_s9 = smov (%p37_p1, %s35_s9), 0  ;;  %p2552_p8 = scmp.ne.s32.totalorder %s2546_s27, 0 }
  0x31   : > { %p2021_p6 = por %p50_p4, %p49_p2  ;;  %s39_s8 = ssub.s32 %s1877_s22, %s2567_s9 }
  0x32   : > { %p2027_p10 = por %p2552_p8, %p49_p2  ;;  %p1635_p12 = scmp.lt.s32.totalorder %s1881_s23, 2 }
  0x33   : > { %p40_p11 = scmp.eq.s32.totalorder %s39_s8, 0  ;;  %s221_s7 = sand.u32 1, %s1869_s20  }
  0x34   : > { %s1505_s14 = sshll.u32 %s221_s7, 12  ;;  %s1569_s16 = sshll.u32 %s1877_s22, 16 }
  0x35   : > { %s2036_s15 = scalar_select %p40_p11, %s1869_s20, %s42_s11  }
  0x36   : > { %s2554_s0 = sld [smem:[#allocation13_spill]]  ;;  %s225_s27 = scalar_lea.vmem [#allocation4], %s1505_s14 }
  0x37   : > { %s232_s6 = sshll.u32 %s225_s27, 4  ;;  %p2048_p13 = pnand %p1635_p12, %p2021_p6  ;;  %s2044_s6 = int_to_ptr.vmem [resolvable:$true] %s232_s6 }
  0x38   : > { %s2052_s11 = scalar_lea.sflag [#allocation5], %s221_s7 }
  0x39   : > { %p1763_p3 = pneg %p2048_p13 }
  0x3c   : > { %s2042_s25 = scalar_lea.hbm %s2554_s0, %s1569_s16  ;;  %s1766_s12 = scalar_lea.hbm %s2554_s0, 131072 }
  0x3d   : > { %s1761_s8 = scalar_lea.hbm %s2042_s25, 65536  ;;  %p1767_p9 = scmp.lt.u32.totalorder %s2042_s25, %s2554_s0 }
  0x3e   : > { %p1762_p0 = scmp.ne.s32.totalorder %s2042_s25, %s1761_s8  ;;  %p1768_p1 = scmp.lt.u32.totalorder %s1766_s12, %s1761_s8 }
  0x3f   : > { %p1770_p4 = scmp.lt.u32.totalorder %s1761_s8, %s2042_s25 }
  0x40   : > { %p1764_p5 = pnand %p1763_p3, %p1762_p0  ;;  %p1769_p2 = por %p1768_p1, %p1767_p9 }
  0x42   : > { %p1765_p7 = pneg %p1764_p5  ;;  %p1771_p6 = por %p1770_p4, %p1769_p2 }
  0x44   : > { %p1772_p8 = pnand %p1771_p6, %p1765_p7 }
  0x46   : > { %1775 = shalt.err (!%p1772_p8)
}
  0x47   : > { %s1776_s7 = scalar_lea.vmem %s2044_s6, 65536  ;;  %s1890_s27 = smov [#allocation4]  }
  0x48   : > { %p1777_p12 = scmp.ne.s32.totalorder %s2044_s6, %s1776_s7  ;;  %s1781_s14 = sshll.u32 %s1890_s27, 4  ;;  %s1782_s14 = int_to_ptr.vmem [resolvable:$false] %s1781_s14 }
  0x49   : > { %s1783_s16 = scalar_lea.vmem %s1782_s14, 131072  ;;  %p1784_p5 = scmp.lt.s32.totalorder %s2044_s6, %s1782_s14 }
  0x4a   : > { %p1779_p11 = pnand %p1777_p12, %p1763_p3  ;;  %p1785_p9 = scmp.lt.s32.totalorder %s1783_s16, %s1776_s7 }
  0x4c   : > { %p1780_p0 = pneg %p1779_p11  ;;  %p1786_p1 = por %p1785_p9, %p1784_p5 }
  0x4e   : > { %p1787_p2 = pnand %p1786_p1, %p1780_p0 }
  0x50   : > { %1790 = shalt.err (!%p1787_p2)
}
  0x51   : > { %s1891_s8 = smov 256   ;;  %s1892_s12 = smov 16  }
  0x52   : > { %1629 = dma.hbm_to_vmem [thread:$0]  (!%p2048_p13), %s2042_s25, 65536, %s2044_s6, %s2052_s11, %s1891_s8, %s1891_s8, %s1892_s12  }
  0x53   : > { %p2556_p3 = scmp.ne.s32.totalorder %s2549_s30, 0 }
  0x54   : > { %s2083_s17 = sand.u32 (!%p2556_p3), 1, %s1865_s19   ;;  %p2557_p7 = scmp.ne.s32.totalorder (!%p2556_p3), %s2547_s28, 0 }
  0x55   : > { %244 = sbr.rel (%p2556_p3) target bundleno = 711 (0x2c7), region = 32  ;;  %s1509_s24 = sshll.u32 (!%p2556_p3), %s2083_s17, 12 }
  0x56   : > { %s247_s7 = scalar_lea.sflag (!%p2556_p3), [#allocation5], %s2083_s17  ;;  %s2087_s27 = scalar_lea.vmem (!%p2556_p3), [#allocation4], %s1509_s24 }
  0x5c   : > { %1848 = dma.done.wait (%p2557_p7), %s247_s7, 65536  }
  0x5d   : > { %1850 = vsyncadd (%p2557_p7), %s247_s7, 4294901760  ;;  %p2558_p13 = scmp.ne.s32.totalorder %s2545_s26, 0 }
  0x5f   : > { %1852 = dma.done.wait (%p2558_p13), [#allocation8], 1024  }
  0x60   : > { %1854 = vsyncadd (%p2558_p13), [#allocation8], 4294966272  ;;  %s1612_s30 = smul.u32 32512, %s2083_s17  ;;  %p300_p4 = scmp.lt.s32.totalorder %s1873_s21, 1  ;;  %vm320_vm0 = vcmask 1031168   ;;  %v1893_v0 = vmov 0.0  }
  0x61   : > { %319 = vst [vmem:[#allocation2] sm:$0xff] %v1893_v0  ;;  %322 = vst [vmem:[#allocation2 + $0x10] sm:$0xff] %v1893_v0  ;;  %s2132_s12 = smov 0  }
  0x62   : > { %324 = vst [vmem:[#allocation2 + $0x20] sm:$0xff] %v1893_v0  ;;  %326 = vst [vmem:[#allocation2 + $0x30] sm:$0xff] %v1893_v0  ;;  %s301_s26 = scalar_select %p300_p4, %s1873_s21, 1 }
  0x63   : > { %328 = vst [vmem:[#allocation2 + $0x40] sm:$0xff] %v1893_v0  ;;  %330 = vst [vmem:[#allocation2 + $0x50] sm:$0xff] %v1893_v0  ;;  %s2130_s8 = scalar_lea.vmem [#allocation9], %s1612_s30 }
  0x64   : > { %332 = vst [vmem:[#allocation2 + $0x60] sm:$0xff] %v1893_v0  ;;  %334 = vst [vmem:[#allocation2 + $0x70] sm:$0xff] %v1893_v0  ;;  %s1570_s28 = sshll.u32 %s301_s26, 6 }
  0x65   : > { %336 = vst [vmem:[#allocation3] sm:$0xff] %v1893_v0  ;;  %338 = vst [vmem:[#allocation3 + $0x10] sm:$0xff] %v1893_v0  ;;  %s2121_s10 = scalar_lea.vmem %s2538_s4, %s1570_s28  ;;  %s2126_s16 = scalar_lea.vmem %s2539_s5, %s1570_s28 }
  0x66   : > { %340 = vst [vmem:[#allocation3 + $0x20] sm:$0xff] %v1893_v0  ;;  %342 = vst [vmem:[#allocation3 + $0x30] sm:$0xff] %v1893_v0 }
  0x67   : > { %344 = vst [vmem:[#allocation3 + $0x40] sm:$0xff] %v1893_v0  ;;  %346 = vst [vmem:[#allocation3 + $0x50] sm:$0xff] %v1893_v0 }
  0x68   : > { %348 = vst [vmem:[#allocation3 + $0x60] sm:$0xff] %v1893_v0  ;;  %350 = vst [vmem:[#allocation3 + $0x70] sm:$0xff] %v1893_v0 }
  0x69   : > { %321 = vst.msk [vmem:[#allocation2 + $0x8] sm:$0xff] %vm320_vm0, %v1893_v0  ;;  %323 = vst.msk [vmem:[#allocation2 + $0x18] sm:$0xff] %vm320_vm0, %v1893_v0 }
  0x6a   : > { %325 = vst.msk [vmem:[#allocation2 + $0x28] sm:$0xff] %vm320_vm0, %v1893_v0  ;;  %327 = vst.msk [vmem:[#allocation2 + $0x38] sm:$0xff] %vm320_vm0, %v1893_v0 }
  0x6b   : > { %329 = vst.msk [vmem:[#allocation2 + $0x48] sm:$0xff] %vm320_vm0, %v1893_v0  ;;  %331 = vst.msk [vmem:[#allocation2 + $0x58] sm:$0xff] %vm320_vm0, %v1893_v0 }
  0x6c   : > { %333 = vst.msk [vmem:[#allocation2 + $0x68] sm:$0xff] %vm320_vm0, %v1893_v0  ;;  %335 = vst.msk [vmem:[#allocation2 + $0x78] sm:$0xff] %vm320_vm0, %v1893_v0 }
  0x6d   : > { %337 = vst.msk [vmem:[#allocation3 + $0x8] sm:$0xff] %vm320_vm0, %v1893_v0  ;;  %339 = vst.msk [vmem:[#allocation3 + $0x18] sm:$0xff] %vm320_vm0, %v1893_v0 }
  0x6e   : > { %341 = vst.msk [vmem:[#allocation3 + $0x28] sm:$0xff] %vm320_vm0, %v1893_v0  ;;  %343 = vst.msk [vmem:[#allocation3 + $0x38] sm:$0xff] %vm320_vm0, %v1893_v0 }
  0x6f   : > { %345 = vst.msk [vmem:[#allocation3 + $0x48] sm:$0xff] %vm320_vm0, %v1893_v0  ;;  %347 = vst.msk [vmem:[#allocation3 + $0x58] sm:$0xff] %vm320_vm0, %v1893_v0 }
  0x70   : > { %349 = vst.msk [vmem:[#allocation3 + $0x68] sm:$0xff] %vm320_vm0, %v1893_v0  ;;  %351 = vst.msk [vmem:[#allocation3 + $0x78] sm:$0xff] %vm320_vm0, %v1893_v0 }
  0x71 LB: >> { %s1573_s24 = sshll.u32 %s1885_s12, 5  ;;  %s1894_s30 = smov 126   ;;  %v1896_v12 = vmov 0.0   ;;  %v478_v13 = vld [vmem:[%s2536_s2] sm:$0xff]  ;;  %v479_v14 = vld [vmem:[%s2536_s2 + $0x8] sm:$0xff]  ;;  %v1897_v15 = vmov 0   ;;  %s1885_s12 = sphi %s2132_s12, %s357_s12  }
  0x72   : >> { %s362_s7 = scalar_lea.vmem %s2087_s27, %s1573_s24 [#allocation4]  ;;  %s1895_s26 = smov 127   ;;  %615 = vmatprep.mubr.f32.mxu0 %v1896_v12  ;;  %728 = vmatprep.mubr.f32.mxu1 %v1896_v12  ;;  %v480_v16 = vld [vmem:[%s2536_s2 + $0x10] sm:$0xff]  ;;  %v482_v17 = vld [vmem:[%s2536_s2 + $0x20] sm:$0xff]  ;;  %v481_v18 = vld [vmem:[%s2536_s2 + $0x18] sm:$0xff]  ;;  %vm395_vm1 = vcmask 1039360   ;;  %vm526_vm2 = vcmask 588800  }
  0x73   : >> { %v364_v1 = vld [vmem:[%s362_s7 + $0x8] sm:$0xff]  ;;  %v2139_v2 = vld [vmem:[%s362_s7 + $0x10] sm:$0xff]  ;;  %v2141_v3 = vld [vmem:[%s362_s7] sm:$0xff]  ;;  %1731 = vset.pattern.permute.xlu1 %v1897_v15  ;;  %1732 = vset.pattern.permute.xlu0 %v1897_v15  ;;  %s1578_s0 = sshll.u32 %s1885_s12, 8  ;;  %s357_s12 = sadd.s32 1, %s1885_s12  }
  0x74   : >> { %v1716_v4 = vpack.i.bf16 %v2139_v2, %v364_v1  ;;  %v2144_v5 = vld [vmem:[%s362_s7 + $0x18] sm:$0xff]  ;;  %v2148_v7 = vld [vmem:[%s362_s7 + $0x20] sm:$0xff]  ;;  %v2150_v8 = vld [vmem:[%s362_s7 + $0x28] sm:$0xff]  ;;  %p354_p6 = scmp.ge.s32.totalorder %s357_s12, 127  }
  0x75   : >> { %v1721_v6 = vpack.i.bf16 %v2144_v5, %v2141_v3  ;;  %v2152_v9 = vld [vmem:[%s362_s7 + $0x30] sm:$0xff]  ;;  %v2159_v11 = vld [vmem:[%s362_s7 + $0x38] sm:$0xff]  ;;  %v483_v20 = vld [vmem:[%s2536_s2 + $0x28] sm:$0xff]  ;;  %s2255_s7 = scalar_lea.vmem %s2130_s8, %s1578_s0 [#allocation9]  ;;  %s1613_s27 = smul.u32 (%p354_p6), 520192, %s1873_s21 }
  0x76   : >> { %1717 = vrot.lane.b32.xlu1 %v1716_v4, %s1894_s30  ;;  %1707 = vrot.lane.b32.xlu0 %v1716_v4, %s1895_s26  ;;  %v1726_v10 = vpack.i.bf16 %v2152_v9, %v2150_v8  ;;  %v484_v19 = vld [vmem:[%s2536_s2 + $0x30] sm:$0xff]  ;;  %v485_v21 = vld [vmem:[%s2536_s2 + $0x38] sm:$0xff]  ;;  %s1284_s12 = sshll.u32 (%p354_p6), %s2130_s8, 4  ;;  %s1250_s25 = scalar_lea.sflag (%p354_p6), [#allocation6], %s2083_s17  ;;  %s2453_s12 = int_to_ptr.vmem [resolvable:$true] %s1284_s12 }
  0x77   : > { %s2451_s28 = scalar_lea.hbm (%p354_p6), %s2537_s3, %s1613_s27  ;;  %s1791_s6 = scalar_lea.vmem (%p354_p6), %s2453_s12, 520192 }
  0x78   : > { %p1792_p8 = scmp.ne.s32.totalorder (%p354_p6), %s2453_s12, %s1791_s6  ;;  %s1898_s11 = smov (%p354_p6), [#allocation9]  }
  0x79   : > { %s1795_s14 = sshll.u32 (%p354_p6), %s1898_s11, 4  ;;  %s1796_s14 = int_to_ptr.vmem [resolvable:$false] %s1795_s14 }
  0x7a   : >> { %1722 = vrot.lane.b32.xlu1 %v1721_v6, %s1894_s30  ;;  %1712 = vrot.lane.b32.xlu0 %v1721_v6, %s1895_s26  ;;  %p1793_p12 = pnand (%p354_p6), %p1792_p8, %p2027_p10  ;;  %s1797_s21 = scalar_lea.vmem (%p354_p6), %s1796_s14, 1040384 }
  0x7b   : > { %p1798_p0 = scmp.lt.s32.totalorder (%p354_p6), %s2453_s12, %s1796_s14  ;;  %p1799_p5 = scmp.lt.s32.totalorder (%p354_p6), %s1797_s21, %s1791_s6 }
  0x7c   : > { %p1794_p11 = pneg (%p354_p6), %p1793_p12 }
  0x7d   : > { %p1800_p9 = por (%p354_p6), %p1799_p5, %p1798_p0 }
  0x7e   : >> { %435 = vrot.lane.b32.xlu1 %v2148_v7, %s1894_s30  ;;  %424 = vrot.lane.b32.xlu0 %v2148_v7, %s1895_s26 }
  0x7f   : > { %p1801_p1 = pnand (%p354_p6), %p1800_p9, %p1794_p11 }
  0x82   : >> { %437 = vrot.lane.b32.xlu1 %v2150_v8, %s1894_s30  ;;  %1727 = vrot.lane.b32.xlu0 %v1726_v10, %s1895_s26 }
  0x86   : >> { %450 = vrot.lane.b32.xlu1 %v2159_v11, %s1895_s26  ;;  %459 = vrot.lane.b32.xlu0 %v2152_v9, %s1894_s30 }
  0x8a   : >> { %461 = vrot.lane.b32.xlu0 %v2159_v11, %s1894_s30  ;;  %488 = vperm.xlu1 %1731, %v478_v13  }
  0x8e   : >> { %493 = vperm.xlu0 %1732, %v479_v14   ;;  %498 = vperm.xlu1 %1731, %v480_v16  }
  0x92   : >> { %508 = vperm.xlu0 %1732, %v482_v17   ;;  %503 = vperm.xlu1 %1731, %v481_v18   ;;  %v470_v18 = vld [vmem:[#allocation7] sm:$0xff] }
  0x96   : >> { %518 = vperm.xlu0 %1732, %v484_v19   ;;  %513 = vperm.xlu1 %1731, %v483_v20   ;;  %v473_v19 = vld [vmem:[#allocation7 + $0x18] sm:$0xff]  ;;  %v474_v20 = vld [vmem:[#allocation7 + $0x20] sm:$0xff] }
  0x9a   : >> { %523 = vperm.xlu1 %1731, %v485_v21   ;;  %v475_v21 = vld [vmem:[#allocation7 + $0x28] sm:$0xff] }
  0xe8   : >> { %v1718_v22 = vpop.permute.xlu1 %1717  ;;  %v1708_v23 = vpop.permute.xlu0 %1707 }
  0xe9   : >> { %v1720_v24 = vunpack.i.h.bf16 %v1718_v22  ;;  %v1719_v25 = vunpack.i.l.bf16 %v1718_v22  ;;  %v1710_v26 = vunpack.i.h.bf16 %v1708_v23  ;;  %v1709_v27 = vunpack.i.l.bf16 %v1708_v23  ;;  %v476_v22 = vld [vmem:[#allocation7 + $0x30] sm:$0xff]  ;;  %v477_v23 = vld [vmem:[#allocation7 + $0x38] sm:$0xff] }
  0xeb   : >> { %v397_v28 = vsel %vm395_vm1, %v1709_v27, %v1710_v26  ;;  %v414_v29 = vsel %vm320_vm0, %v1719_v25, %v1720_v24 }
  0xec   : >> { %v1723_v30 = vpop.permute.xlu1 %1722  ;;  %v1713_v31 = vpop.permute.xlu0 %1712  ;;  %v1580_v32 = vpack.c.bf16 %v397_v28, %v364_v1  ;;  %v1584_v40 = vpack.c.bf16 %v2144_v5, %v414_v29 }
  0xed   : >> { %v1725_v33 = vunpack.i.h.bf16 %v1723_v30  ;;  %v1724_v34 = vunpack.i.l.bf16 %v1723_v30  ;;  %v1715_v35 = vunpack.i.h.bf16 %v1713_v31  ;;  %v1714_v36 = vunpack.i.l.bf16 %v1713_v31 }
  0xee   : >> { %1581 = vmatprep.subr.bf16.mxu0 %v1580_v32 }
  0xef   : >> { %v421_v37 = vsel %vm320_vm0, %v1725_v33, %v1724_v34  ;;  %v396_v38 = vsel %vm395_vm1, %v1714_v36, %v1709_v27  ;;  %v404_v39 = vsel %vm395_vm1, %v1715_v35, %v1714_v36  ;;  %v398_v45 = vsel %vm395_vm1, %v1710_v26, %v1715_v35  ;;  %v893_v36 = vld [vmem:[#allocation2 + $0x8] sm:$0xff] }
  0xf0   : >> { %v436_v41 = vpop.permute.xlu1 %435  ;;  %v425_v42 = vpop.permute.xlu0 %424  ;;  %v1582_v43 = vpack.c.bf16 %v396_v38, %v2141_v3  ;;  %v1596_v44 = vpack.c.bf16 %v404_v39, %v2144_v5  ;;  %v413_v46 = vsel %vm320_vm0, %v1724_v34, %v1719_v25  ;;  %v1598_v49 = vpack.c.bf16 %v398_v45, %v2139_v2 }
  0xf1   : >> { %v439_v47 = vsel %vm320_vm0, %v1725_v33, %v436_v41  ;;  %v428_v48 = vsel %vm395_vm1, %v1715_v35, %v425_v42  ;;  %v415_v50 = vsel %vm320_vm0, %v1720_v24, %v1725_v33  ;;  %v1600_v51 = vpack.c.bf16 %v2150_v8, %v421_v37 }
  0xf2   : >> { %1583 = vmatpush1.bf16.msra.mxu0 %v1582_v43  ;;  %1597 = vmatprep.subr.bf16.mxu1 %v1596_v44  ;;  %v1586_v54 = vpack.c.bf16 %v2139_v2, %v413_v46  ;;  %v1588_v55 = vpack.c.bf16 %v439_v47, %v428_v48  ;;  %v1602_v59 = vpack.c.bf16 %v2148_v7, %v415_v50  ;;  %v941_v48 = vld [vmem:[#allocation3 + $0x8] sm:$0xff] }
  0xf3   : >> { %1585 = vmatprep.subr.bf16.mxu0 %v1584_v40  ;;  %1599 = vmatpush1.bf16.msra.mxu1 %v1598_v49  ;;  %v1590_v0 = vpack.c.bf16 %v415_v50, %v398_v45  ;;  %v940_v40 = vld [vmem:[#allocation3] sm:$0xff] }
  0xf4   : >> { %v438_v52 = vpop.permute.xlu1 %437  ;;  %v1728_v53 = vpop.permute.xlu0 %1727  ;;  %1601 = vmatprep.subr.bf16.mxu1 %v1600_v51 }
  0xf5   : >> { %v440_v56 = vsel %vm320_vm0, %v436_v41, %v438_v52  ;;  %v1730_v57 = vunpack.i.h.bf16 %v1728_v53  ;;  %v1729_v58 = vunpack.i.l.bf16 %v1728_v53  ;;  %v445_v60 = vsel %vm320_vm0, %v438_v52, %v1720_v24 }
  0xf6   : >> { %1587 = vmatpush1.bf16.msra.mxu0 %v1586_v54  ;;  %v894_v54 = vld [vmem:[#allocation2 + $0x10] sm:$0xff] }
  0xf7   : >> { %1589 = vmatprep.subr.bf16.mxu0 %v1588_v55  ;;  %1603 = vmatpush1.bf16.msra.mxu1 %v1602_v59  ;;  %v434_v61 = vsel %vm395_vm1, %v1729_v58, %v1710_v26  ;;  %v429_v62 = vsel %vm395_vm1, %v425_v42, %v1729_v58  ;;  %v452_v63 = vsel %vm395_vm1, %v1729_v58, %v1730_v57 }
  0xf8   : >> { %v451_v1 = vpop.permute.xlu1 %450  ;;  %v460_v2 = vpop.permute.xlu0 %459  ;;  %v1604_v3 = vpack.c.bf16 %v445_v60, %v434_v61  ;;  %v1606_v4 = vpack.c.bf16 %v440_v56, %v429_v62  ;;  %v1592_v5 = vpack.c.bf16 %v452_v63, %v2150_v8  ;;  %v1594_v15 = vpack.c.bf16 %v429_v62, %v2148_v7  ;;  %v471_v7 = vld [vmem:[#allocation7 + $0x8] sm:$0xff]  ;;  %v942_v62 = vld [vmem:[#allocation3 + $0x10] sm:$0xff] }
  0xf9   : >> { %v458_v6 = vsel %vm395_vm1, %v451_v1, %v425_v42  ;;  %v453_v10 = vsel %vm395_vm1, %v1730_v57, %v451_v1  ;;  %v463_v16 = vsel %vm320_vm0, %v438_v52, %v460_v2  ;;  %v895_v57 = vld [vmem:[#allocation2 + $0x18] sm:$0xff] }
  0xfa   : >> { %v1608_v13 = vpack.c.bf16 %v458_v6, %v2159_v11  ;;  %1591 = vmatpush1.bf16.msra.mxu0 %v1590_v0  ;;  %1605 = vmatprep.subr.bf16.mxu1 %v1604_v3  ;;  %v1610_v17 = vpack.c.bf16 %v453_v10, %v2152_v9  ;;  %v472_v9 = vld [vmem:[#allocation7 + $0x10] sm:$0xff]  ;;  %v943_v6 = vld [vmem:[#allocation3 + $0x18] sm:$0xff] }
  0xfb   : >> { %1607 = vmatpush1.bf16.msra.mxu1 %v1606_v4  ;;  %1593 = vmatprep.subr.bf16.mxu0 %v1592_v5 }
  0xfc   : >> { %v462_v14 = vpop.permute.xlu0 %461  ;;  %1609 = vmatprep.subr.bf16.mxu1 %v1608_v13 }
  0xfd   : >> { %v469_v8 = vsel %vm320_vm0, %v462_v14, %v436_v41  ;;  %v464_v11 = vsel %vm320_vm0, %v460_v2, %v462_v14 }
  0xfe   : >> { %1595 = vmatpush1.bf16.msra.mxu0 %v1594_v15 }
  0xff   : >> { %1611 = vmatpush1.bf16.msra.mxu1 %v1610_v17  ;;  %567 = vmatprep.subr.mxu0 %v463_v16 }
 0x100   : >> { %680 = vmatprep.subr.mxu1 %v469_v8 }
 0x102   : >> { %568 = vmatpush1.msra.mxu0 %v440_v56 }
 0x103   : >> { %1530 = vmatmul.mubr.msk.f32.vlgmr.msra.gmra.mrb[0].mxu0 %vm526_vm2, %v470_v18  ;;  %681 = vmatpush1.msra.mxu1 %v464_v11 }
 0x104   : >> { %1538 = vmatmul.mubr.msk.f32.vlgmr.msra.gmra.mrb[0].mxu1 %vm526_vm2, %v470_v18  ;;  %621 = vmatprep.mubr.f32.mxu0 %v1896_v12 }
 0x105   : >> { %734 = vmatprep.mubr.f32.mxu1 %v1896_v12 }
 0x107   : >> { %1531 = vmatmul.mubr.msk.f32.gmra.mrb[2].mxu0 %vm526_vm2, %v471_v7 }
 0x108   : >> { %1539 = vmatmul.mubr.msk.f32.gmra.mrb[2].mxu1 %vm526_vm2, %v471_v7  ;;  %627 = vmatprep.mubr.f32.mxu0 %v1896_v12 }
 0x109   : >> { %740 = vmatprep.mubr.f32.mxu1 %v1896_v12  ;;  %v489_v24 = vpop.permute.xlu1 %488 }
 0x10b   : >> { %1532 = vmatmul.mubr.msk.f32.gmra.mrb[4].mxu0 %vm526_vm2, %v472_v9 }
 0x10c   : >> { %1540 = vmatmul.mubr.msk.f32.gmra.mrb[4].mxu1 %vm526_vm2, %v472_v9  ;;  %633 = vmatprep.mubr.f32.mxu0 %v1896_v12 }
 0x10d   : >> { %746 = vmatprep.mubr.f32.mxu1 %v1896_v12  ;;  %v2252_v30 = vpop.permute.xlu0 %493  ;;  %v499_v14 = vpop.permute.xlu1 %498 }
 0x10f   : >> { %1533 = vmatmul.mubr.msk.f32.gmra.mrb[6].mxu0 %vm526_vm2, %v473_v19 }
 0x110   : >> { %1541 = vmatmul.mubr.msk.f32.gmra.mrb[6].mxu1 %vm526_vm2, %v473_v19  ;;  %639 = vmatprep.mubr.f32.mxu0 %v1896_v12 }
 0x111   : >> { %752 = vmatprep.mubr.f32.mxu1 %v1896_v12 }
 0x113   : >> { %1534 = vmatmul.mubr.msk.f32.gmra.mrb[8].mxu0 %vm526_vm2, %v474_v20 }
 0x114   : >> { %1542 = vmatmul.mubr.msk.f32.gmra.mrb[8].mxu1 %vm526_vm2, %v474_v20  ;;  %645 = vmatprep.mubr.f32.mxu0 %v1896_v12 }
 0x115   : >> { %758 = vmatprep.mubr.f32.mxu1 %v1896_v12 }
 0x117   : >> { %1535 = vmatmul.mubr.msk.f32.gmra.mrb[10].mxu0 %vm526_vm2, %v475_v21 }
 0x118   : >> { %1543 = vmatmul.mubr.msk.f32.gmra.mrb[10].mxu1 %vm526_vm2, %v475_v21  ;;  %651 = vmatprep.mubr.f32.mxu0 %v1896_v12 }
 0x119   : >> { %764 = vmatprep.mubr.f32.mxu1 %v1896_v12 }
 0x11b   : >> { %1536 = vmatmul.mubr.msk.f32.gmra.mrb[12].mxu0 %vm526_vm2, %v476_v22 }
 0x11c   : >> { %1544 = vmatmul.mubr.msk.f32.gmra.mrb[12].mxu1 %vm526_vm2, %v476_v22  ;;  %657 = vmatprep.mubr.f32.mxu0 %v1896_v12 }
 0x11d   : >> { %770 = vmatprep.mubr.f32.mxu1 %v1896_v12  ;;  %v892_v12 = vld [vmem:[#allocation2] sm:$0xff] }
 0x11f   : >> { %1537 = vmatmul.mubr.msk.f32.gmra.mrb[14].mxu0 %vm526_vm2, %v477_v23 }
 0x120   : >> { %1545 = vmatmul.mubr.msk.f32.gmra.mrb[14].mxu1 %vm526_vm2, %v477_v23 }
 0x1d6   : >> { %v617_v25 = vpop.f32.mrb[0].mxu0 }
 0x1d7   : >> { %v618_v26 = vadd.f32 %v617_v25, %v489_v24  ;;  %v619_v27 = vpop.f32.mrb[1].mxu0  ;;  %v730_v28 = vpop.f32.mrb[0].mxu1 }
 0x1d8   : >> { %v620_v29 = vadd.f32 %v619_v27, %v489_v24  ;;  %v731_v31 = vadd.f32 %v730_v28, %v489_v24  ;;  %v732_v32 = vpop.f32.mrb[1].mxu1  ;;  %v896_v27 = vld [vmem:[#allocation2 + $0x20] sm:$0xff] }
 0x1d9   : >> { %vm777_vm3 = vcmp.gt.f32.partialorder %v618_v26, 0.0  ;;  %v809_v33 = vmul.f32 0.25, %v618_v26  ;;  %v733_v34 = vadd.f32 %v732_v32, %v489_v24 }
 0x1da   : >> { %vm778_vm4 = vcmp.gt.f32.partialorder %v620_v29, 0.0  ;;  %v810_v35 = vmul.f32 0.25, %v620_v29  ;;  %v623_v37 = vpop.f32.mrb[2].mxu0  ;;  %vm779_vm5 = vcmp.gt.f32.partialorder %v731_v31, 0.0  ;;  %v811_v38 = vmul.f32 0.25, %v731_v31 }
 0x1db   : >> { %v841_v39 = vsel %vm777_vm3, %v618_v26, %v809_v33  ;;  %v624_v41 = vadd.f32 %v623_v37, %v2252_v30  ;;  %v625_v42 = vpop.f32.mrb[3].mxu0  ;;  %vm780_vm6 = vcmp.gt.f32.partialorder %v733_v34, 0.0  ;;  %v812_v43 = vmul.f32 0.25, %v733_v34  ;;  %v736_v44 = vpop.f32.mrb[2].mxu1 }
 0x1dc   : >> { %876 = vst [vmem:[%s2255_s7] sm:$0xff] %v841_v39  ;;  %v908_v45 = vadd.f32 %v892_v12, %v841_v39  ;;  %v956_v46 = vmul.f32 %v841_v39, %v841_v39  ;;  %v842_v47 = vsel %vm778_vm4, %v620_v29, %v810_v35  ;;  %v626_v49 = vadd.f32 %v625_v42, %v2252_v30  ;;  %v738_v50 = vpop.f32.mrb[3].mxu1  ;;  %v944_v12 = vld [vmem:[#allocation3 + $0x20] sm:$0xff]  ;;  %v897_v35 = vld [vmem:[#allocation2 + $0x28] sm:$0xff] }
 0x1dd   : >> { %877 = vst.msk [vmem:[%s2255_s7 + $0x8] sm:$0xff] %vm320_vm0, %v842_v47  ;;  %v909_v51 = vadd.f32 %v893_v36, %v842_v47  ;;  %v957_v52 = vmul.f32 %v842_v47, %v842_v47  ;;  %vm781_vm7 = vcmp.gt.f32.partialorder %v624_v41, 0.0  ;;  %v813_v53 = vmul.f32 0.25, %v624_v41  ;;  %v945_v47 = vld [vmem:[#allocation3 + $0x28] sm:$0xff] }
 0x1de   : >> { %v972_v55 = vadd.f32 %v956_v46, %v940_v40  ;;  %vm782_vm8 = vcmp.gt.f32.partialorder %v626_v49, 0.0  ;;  %v814_v56 = vmul.f32 0.25, %v626_v49  ;;  %v843_v58 = vsel %vm779_vm5, %v731_v31, %v811_v38  ;;  %v629_v59 = vpop.f32.mrb[4].mxu0 }
 0x1df   : >> { %925 = vst.msk [vmem:[#allocation2 + $0x8] sm:$0xff] %vm320_vm0, %v909_v51  ;;  %v973_v60 = vadd.f32 %v957_v52, %v941_v48  ;;  %v845_v61 = vsel %vm781_vm7, %v624_v41, %v813_v53  ;;  %1550 = vst [vmem:[%s2255_s7 + $0x80] sm:$0xff] %v843_v58  ;;  %v1040_v63 = vadd.f32 %v908_v45, %v843_v58  ;;  %v631_v1 = vpop.f32.mrb[5].mxu0  ;;  %v742_v2 = vpop.f32.mrb[4].mxu1 }
 0x1e0   : >> { %v1088_v0 = vmul.f32 %v843_v58, %v843_v58  ;;  %878 = vst [vmem:[%s2255_s7 + $0x10] sm:$0xff] %v845_v61  ;;  %v910_v3 = vadd.f32 %v894_v54, %v845_v61  ;;  %v958_v4 = vmul.f32 %v845_v61, %v845_v61  ;;  %v846_v5 = vsel %vm782_vm8, %v626_v49, %v814_v56  ;;  %v744_v13 = vpop.f32.mrb[5].mxu1  ;;  %v504_v51 = vpop.permute.xlu1 %503 }
 0x1e1   : >> { %v844_v10 = vsel %vm780_vm6, %v733_v34, %v812_v43  ;;  %989 = vst.msk [vmem:[#allocation3 + $0x8] sm:$0xff] %vm320_vm0, %v973_v60  ;;  %879 = vst.msk [vmem:[%s2255_s7 + $0x18] sm:$0xff] %vm320_vm0, %v846_v5  ;;  %v911_v15 = vadd.f32 %v895_v57, %v846_v5  ;;  %v959_v16 = vmul.f32 %v846_v5, %v846_v5  ;;  %v2305_v61 = vpop.permute.xlu0 %508 }
 0x1e2   : >> { %1056 = vst [vmem:[#allocation2] sm:$0xff] %v1040_v63  ;;  %v1104_v17 = vadd.f32 %v1088_v0, %v972_v55  ;;  %1551 = vst.msk [vmem:[%s2255_s7 + $0x88] sm:$0xff] %vm320_vm0, %v844_v10  ;;  %v1089_v8 = vmul.f32 %v844_v10, %v844_v10  ;;  %v974_v18 = vadd.f32 %v958_v4, %v942_v62  ;;  %v2275_v19 = vpop.f32.mrb[6].mxu0 }
 0x1e3   : >> { %v630_v11 = vadd.f32 %v629_v59, %v499_v14  ;;  %v737_v7 = vadd.f32 %v736_v44, %v2252_v30  ;;  %v632_v9 = vadd.f32 %v631_v1, %v499_v14  ;;  %927 = vst.msk [vmem:[#allocation2 + $0x18] sm:$0xff] %vm320_vm0, %v911_v15  ;;  %v975_v20 = vadd.f32 %v959_v16, %v943_v6  ;;  %v2281_v24 = vpop.f32.mrb[7].mxu0  ;;  %v2283_v25 = vpop.f32.mrb[6].mxu1 }
 0x1e4   : >> { %1120 = vst [vmem:[#allocation3] sm:$0xff] %v1104_v17  ;;  %v739_v21 = vadd.f32 %v738_v50, %v2252_v30  ;;  %v743_v22 = vadd.f32 %v742_v2, %v499_v14  ;;  %v2279_v23 = vadd.f32 %v744_v13, %v499_v14  ;;  %v2285_v29 = vpop.f32.mrb[7].mxu1  ;;  %v636_v6 = vadd.f32 %v2275_v19, %v504_v51 }
 0x1e5   : >> { %vm785_vm9 = vcmp.gt.f32.partialorder %v630_v11, 0.0  ;;  %v817_v26 = vmul.f32 0.25, %v630_v11  ;;  %vm783_vm10 = vcmp.gt.f32.partialorder %v737_v7, 0.0  ;;  %v815_v28 = vmul.f32 0.25, %v737_v7  ;;  %991 = vst.msk [vmem:[#allocation3 + $0x18] sm:$0xff] %vm320_vm0, %v975_v20 }
 0x1e6   : >> { %vm786_vm11 = vcmp.gt.f32.partialorder %v632_v9, 0.0  ;;  %v818_v30 = vmul.f32 0.25, %v632_v9  ;;  %vm784_vm12 = vcmp.gt.f32.partialorder %v739_v21, 0.0  ;;  %v816_v31 = vmul.f32 0.25, %v739_v21  ;;  %v1025_v32 = vld [vmem:[#allocation2 + $0x8] sm:$0xff]  ;;  %v641_v37 = vpop.f32.mrb[8].mxu0 }
 0x1e7   : >> { %v849_v33 = vsel %vm785_vm9, %v630_v11, %v817_v26  ;;  %v847_v34 = vsel %vm783_vm10, %v737_v7, %v815_v28  ;;  %vm787_vm13 = vcmp.gt.f32.partialorder %v743_v22, 0.0  ;;  %v819_v36 = vmul.f32 0.25, %v743_v22  ;;  %v2290_v42 = vpop.f32.mrb[9].mxu0  ;;  %v2292_v43 = vpop.f32.mrb[8].mxu1  ;;  %v898_v7 = vld [vmem:[#allocation2 + $0x30] sm:$0xff] }
 0x1e8   : >> { %v1041_v38 = vadd.f32 %v1025_v32, %v844_v10  ;;  %880 = vst [vmem:[%s2255_s7 + $0x20] sm:$0xff] %v849_v33  ;;  %v912_v39 = vadd.f32 %v896_v27, %v849_v33  ;;  %v960_v40 = vmul.f32 %v849_v33, %v849_v33  ;;  %1552 = vst [vmem:[%s2255_s7 + $0x90] sm:$0xff] %v847_v34  ;;  %v1073_v44 = vld [vmem:[#allocation3 + $0x8] sm:$0xff]  ;;  %v2297_v50 = vpop.f32.mrb[9].mxu1  ;;  %vm788_vm14 = vcmp.gt.f32.partialorder %v2279_v23, 0.0  ;;  %v947_v32 = vld [vmem:[#allocation3 + $0x38] sm:$0xff] }
 0x1e9   : >> { %v1042_v41 = vadd.f32 %v910_v3, %v847_v34  ;;  %v1090_v45 = vmul.f32 %v847_v34, %v847_v34  ;;  %v850_v46 = vsel %vm786_vm11, %v632_v9, %v818_v30  ;;  %v848_v48 = vsel %vm784_vm12, %v739_v21, %v816_v31  ;;  %v899_v9 = vld [vmem:[#allocation2 + $0x38] sm:$0xff] }
 0x1ea   : >> { %v851_v49 = vsel %vm787_vm13, %v743_v22, %v819_v36  ;;  %1057 = vst.msk [vmem:[#allocation2 + $0x8] sm:$0xff] %vm320_vm0, %v1041_v38  ;;  %v1105_v52 = vadd.f32 %v1089_v8, %v1073_v44  ;;  %v976_v53 = vadd.f32 %v960_v40, %v944_v12  ;;  %881 = vst.msk [vmem:[%s2255_s7 + $0x28] sm:$0xff] %vm320_vm0, %v850_v46  ;;  %v1027_v57 = vld [vmem:[#allocation2 + $0x18] sm:$0xff]  ;;  %v2307_v62 = vpop.f32.mrb[10].mxu0  ;;  %v820_v1 = vmul.f32 0.25, %v2279_v23  ;;  %v900_v38 = vld [vmem:[#allocation2 + $0x40] sm:$0xff] }
 0x1eb   : >> { %1058 = vst [vmem:[#allocation2 + $0x10] sm:$0xff] %v1042_v41  ;;  %v913_v54 = vadd.f32 %v897_v35, %v850_v46  ;;  %v961_v55 = vmul.f32 %v850_v46, %v850_v46  ;;  %1553 = vst.msk [vmem:[%s2255_s7 + $0x98] sm:$0xff] %vm320_vm0, %v848_v48  ;;  %v1106_v56 = vadd.f32 %v1090_v45, %v974_v18  ;;  %v2313_v2 = vpop.f32.mrb[11].mxu0  ;;  %v2315_v3 = vpop.f32.mrb[10].mxu1  ;;  %vm789_vm15 = vcmp.gt.f32.partialorder %v636_v6, 0.0 }
 0x1ec   : >> { %1554 = vst [vmem:[%s2255_s7 + $0xa0] sm:$0xff] %v851_v49  ;;  %v1091_v58 = vmul.f32 %v848_v48, %v848_v48  ;;  %v1044_v59 = vadd.f32 %v912_v39, %v851_v49  ;;  %v1092_v60 = vmul.f32 %v851_v49, %v851_v49  ;;  %1121 = vst.msk [vmem:[#allocation3 + $0x8] sm:$0xff] %vm320_vm0, %v1105_v52  ;;  %v1075_v4 = vld [vmem:[#allocation3 + $0x18] sm:$0xff]  ;;  %v2320_v14 = vpop.f32.mrb[11].mxu1  ;;  %v821_v11 = vmul.f32 0.25, %v636_v6  ;;  %v948_v52 = vld [vmem:[#allocation3 + $0x40] sm:$0xff] }
 0x1ed   : >> { %929 = vst.msk [vmem:[#allocation2 + $0x28] sm:$0xff] %vm320_vm0, %v913_v54  ;;  %v977_v63 = vadd.f32 %v961_v55, %v945_v47  ;;  %v1043_v0 = vadd.f32 %v1027_v57, %v848_v48  ;;  %1122 = vst [vmem:[#allocation3 + $0x10] sm:$0xff] %v1106_v56  ;;  %v638_v10 = vadd.f32 %v2281_v24, %v504_v51 }
 0x1ee   : >> { %1060 = vst [vmem:[#allocation2 + $0x20] sm:$0xff] %v1044_v59  ;;  %v1108_v5 = vadd.f32 %v1092_v60, %v976_v53  ;;  %v749_v13 = vadd.f32 %v2283_v25, %v504_v51  ;;  %v1107_v15 = vadd.f32 %v1091_v58, %v1075_v4  ;;  %v852_v16 = vsel %vm788_vm14, %v2279_v23, %v820_v1  ;;  %v2329_v19 = vpop.f32.mrb[12].mxu0  ;;  %v946_v25 = vld [vmem:[#allocation3 + $0x30] sm:$0xff]  ;;  %v514_v60 = vpop.permute.xlu1 %513 }
 0x1ef   : >> { %993 = vst.msk [vmem:[#allocation3 + $0x28] sm:$0xff] %vm320_vm0, %v977_v63  ;;  %1059 = vst.msk [vmem:[#allocation2 + $0x18] sm:$0xff] %vm320_vm0, %v1043_v0  ;;  %v751_v17 = vadd.f32 %v2285_v29, %v504_v51  ;;  %v642_v8 = vadd.f32 %v641_v37, %v2305_v61  ;;  %v1093_v18 = vmul.f32 %v852_v16, %v852_v16  ;;  %vm790_vm1 = vcmp.gt.f32.partialorder %v638_v10, 0.0  ;;  %v2332_v22 = vpop.f32.mrb[13].mxu0  ;;  %v2334_v23 = vpop.f32.mrb[12].mxu1 }
 0x1f0   : >> { %1124 = vst [vmem:[#allocation3 + $0x20] sm:$0xff] %v1108_v5  ;;  %1555 = vst.msk [vmem:[%s2255_s7 + $0xa8] sm:$0xff] %vm320_vm0, %v852_v16  ;;  %v822_v20 = vmul.f32 0.25, %v638_v10  ;;  %vm791_vm2 = vcmp.gt.f32.partialorder %v749_v13, 0.0  ;;  %v823_v21 = vmul.f32 0.25, %v749_v13  ;;  %v853_v24 = vsel %vm789_vm15, %v636_v6, %v821_v11  ;;  %v2336_v28 = vpop.f32.mrb[13].mxu1 }
 0x1f1   : >> { %1123 = vst.msk [vmem:[#allocation3 + $0x18] sm:$0xff] %vm320_vm0, %v1107_v15  ;;  %vm792_vm3 = vcmp.gt.f32.partialorder %v751_v17, 0.0  ;;  %v824_v26 = vmul.f32 0.25, %v751_v17  ;;  %vm793_vm4 = vcmp.gt.f32.partialorder %v642_v8, 0.0  ;;  %v825_v27 = vmul.f32 0.25, %v642_v8  ;;  %882 = vst [vmem:[%s2255_s7 + $0x30] sm:$0xff] %v853_v24 }
 0x1f2   : >> { %v914_v29 = vadd.f32 %v898_v7, %v853_v24  ;;  %v962_v30 = vmul.f32 %v853_v24, %v853_v24  ;;  %v854_v31 = vsel %vm790_vm1, %v638_v10, %v822_v20  ;;  %v855_v33 = vsel %vm791_vm2, %v749_v13, %v823_v21  ;;  %v2345_v39 = vpop.f32.mrb[14].mxu0  ;;  %v949_v10 = vld [vmem:[#allocation3 + $0x48] sm:$0xff] }
 0x1f3   : >> { %883 = vst.msk [vmem:[%s2255_s7 + $0x38] sm:$0xff] %vm320_vm0, %v854_v31  ;;  %v915_v34 = vadd.f32 %v899_v9, %v854_v31  ;;  %v963_v35 = vmul.f32 %v854_v31, %v854_v31  ;;  %1556 = vst [vmem:[%s2255_s7 + $0xb0] sm:$0xff] %v855_v33  ;;  %v1094_v36 = vmul.f32 %v855_v33, %v855_v33  ;;  %v2351_v46 = vpop.f32.mrb[15].mxu0  ;;  %v2353_v47 = vpop.f32.mrb[14].mxu1  ;;  %v903_v9 = vld [vmem:[#allocation2 + $0x58] sm:$0xff] }
 0x1f4   : >> { %v1029_v12 = vld [vmem:[#allocation2 + $0x28] sm:$0xff]  ;;  %v856_v37 = vsel %vm792_vm3, %v751_v17, %v824_v26  ;;  %v978_v41 = vadd.f32 %v962_v30, %v946_v25  ;;  %v1046_v44 = vadd.f32 %v914_v29, %v855_v33  ;;  %v857_v51 = vsel %vm793_vm4, %v642_v8, %v825_v27  ;;  %v2361_v55 = vpop.f32.mrb[15].mxu1  ;;  %v950_v25 = vld [vmem:[#allocation3 + $0x50] sm:$0xff] }
 0x1f5   : >> { %v1045_v40 = vadd.f32 %v1029_v12, %v852_v16  ;;  %1557 = vst.msk [vmem:[%s2255_s7 + $0xb8] sm:$0xff] %vm320_vm0, %v856_v37  ;;  %v2349_v45 = vmul.f32 %v856_v37, %v856_v37  ;;  %931 = vst.msk [vmem:[#allocation2 + $0x38] sm:$0xff] %vm320_vm0, %v915_v34  ;;  %v979_v49 = vadd.f32 %v963_v35, %v947_v32  ;;  %v951_v32 = vld [vmem:[#allocation3 + $0x58] sm:$0xff]  ;;  %v519_v12 = vpop.permute.xlu0 %518 }
 0x1f6   : >> { %v1077_v48 = vld [vmem:[#allocation3 + $0x28] sm:$0xff]  ;;  %v644_v53 = vadd.f32 %v2290_v42, %v2305_v61  ;;  %v755_v54 = vadd.f32 %v2292_v43, %v2305_v61  ;;  %1062 = vst [vmem:[#allocation2 + $0x30] sm:$0xff] %v1046_v44  ;;  %v1110_v57 = vadd.f32 %v1094_v36, %v978_v41  ;;  %884 = vst [vmem:[%s2255_s7 + $0x40] sm:$0xff] %v857_v51 }
 0x1f7   : >> { %1061 = vst.msk [vmem:[#allocation2 + $0x28] sm:$0xff] %vm320_vm0, %v1045_v40  ;;  %v1109_v56 = vadd.f32 %v1093_v18, %v1077_v48  ;;  %v916_v58 = vadd.f32 %v900_v38, %v857_v51  ;;  %v964_v59 = vmul.f32 %v857_v51, %v857_v51  ;;  %995 = vst.msk [vmem:[#allocation3 + $0x38] sm:$0xff] %vm320_vm0, %v979_v49  ;;  %v901_v42 = vld [vmem:[#allocation2 + $0x48] sm:$0xff] }
 0x1f8   : >> { %vm794_vm5 = vcmp.gt.f32.partialorder %v644_v53, 0.0  ;;  %v826_v63 = vmul.f32 0.25, %v644_v53  ;;  %vm795_vm6 = vcmp.gt.f32.partialorder %v755_v54, 0.0  ;;  %v827_v43 = vmul.f32 0.25, %v755_v54  ;;  %1126 = vst [vmem:[#allocation3 + $0x30] sm:$0xff] %v1110_v57 }
 0x1f9   : >> { %1125 = vst.msk [vmem:[#allocation3 + $0x28] sm:$0xff] %vm320_vm0, %v1109_v56  ;;  %v980_v0 = vadd.f32 %v964_v59, %v948_v52  ;;  %v757_v1 = vadd.f32 %v2297_v50, %v2305_v61  ;;  %v648_v4 = vadd.f32 %v2307_v62, %v514_v60  ;;  %v650_v5 = vadd.f32 %v2313_v2, %v514_v60  ;;  %v902_v62 = vld [vmem:[#allocation2 + $0x50] sm:$0xff]  ;;  %v904_v56 = vld [vmem:[#allocation2 + $0x60] sm:$0xff] }
 0x1fa   : >> { %v858_v6 = vsel %vm794_vm5, %v644_v53, %v826_v63  ;;  %v859_v13 = vsel %vm795_vm6, %v755_v54, %v827_v43  ;;  %v761_v15 = vadd.f32 %v2315_v3, %v514_v60  ;;  %v763_v16 = vadd.f32 %v2320_v14, %v514_v60  ;;  %v952_v43 = vld [vmem:[#allocation3 + $0x60] sm:$0xff] }
 0x1fb   : >> { %885 = vst.msk [vmem:[%s2255_s7 + $0x48] sm:$0xff] %vm320_vm0, %v858_v6  ;;  %v917_v17 = vadd.f32 %v901_v42, %v858_v6  ;;  %v965_v8 = vmul.f32 %v858_v6, %v858_v6  ;;  %1558 = vst [vmem:[%s2255_s7 + $0xc0] sm:$0xff] %v859_v13  ;;  %v1048_v18 = vadd.f32 %v916_v58, %v859_v13  ;;  %vm796_vm7 = vcmp.gt.f32.partialorder %v757_v1, 0.0  ;;  %v905_v58 = vld [vmem:[#allocation2 + $0x68] sm:$0xff] }
 0x1fc   : >> { %v1096_v11 = vmul.f32 %v859_v13, %v859_v13  ;;  %v828_v50 = vmul.f32 0.25, %v757_v1  ;;  %vm797_vm8 = vcmp.gt.f32.partialorder %v648_v4, 0.0  ;;  %v829_v61 = vmul.f32 0.25, %v648_v4  ;;  %v1031_v2 = vld [vmem:[#allocation2 + $0x38] sm:$0xff] }
 0x1fd   : >> { %933 = vst.msk [vmem:[#allocation2 + $0x48] sm:$0xff] %vm320_vm0, %v917_v17  ;;  %v981_v7 = vadd.f32 %v965_v8, %v949_v10  ;;  %1064 = vst [vmem:[#allocation2 + $0x40] sm:$0xff] %v1048_v18  ;;  %vm798_vm9 = vcmp.gt.f32.partialorder %v650_v5, 0.0  ;;  %v830_v14 = vmul.f32 0.25, %v650_v5  ;;  %v1047_v20 = vadd.f32 %v1031_v2, %v856_v37 }
 0x1fe   : >> { %v1112_v3 = vadd.f32 %v1096_v11, %v980_v0  ;;  %v860_v21 = vsel %vm796_vm7, %v757_v1, %v828_v50  ;;  %v861_v24 = vsel %vm797_vm8, %v648_v4, %v829_v61  ;;  %vm799_vm10 = vcmp.gt.f32.partialorder %v761_v15, 0.0  ;;  %v1079_v26 = vld [vmem:[#allocation3 + $0x38] sm:$0xff] }
 0x1ff   : >> { %997 = vst.msk [vmem:[#allocation3 + $0x48] sm:$0xff] %vm320_vm0, %v981_v7  ;;  %1559 = vst.msk [vmem:[%s2255_s7 + $0xc8] sm:$0xff] %vm320_vm0, %v860_v21  ;;  %v1097_v27 = vmul.f32 %v860_v21, %v860_v21  ;;  %v918_v29 = vadd.f32 %v902_v62, %v861_v24  ;;  %v966_v30 = vmul.f32 %v861_v24, %v861_v24  ;;  %v831_v36 = vmul.f32 0.25, %v761_v15  ;;  %v906_v7 = vld [vmem:[#allocation2 + $0x70] sm:$0xff] }
 0x200   : >> { %1128 = vst [vmem:[#allocation3 + $0x40] sm:$0xff] %v1112_v3  ;;  %886 = vst [vmem:[%s2255_s7 + $0x50] sm:$0xff] %v861_v24  ;;  %v862_v31 = vsel %vm798_vm9, %v650_v5, %v830_v14  ;;  %v1111_v33 = vadd.f32 %v2349_v45, %v1079_v26  ;;  %vm800_vm11 = vcmp.gt.f32.partialorder %v763_v16, 0.0  ;;  %v832_v38 = vmul.f32 0.25, %v763_v16 }
 0x201   : >> { %1063 = vst.msk [vmem:[#allocation2 + $0x38] sm:$0xff] %vm320_vm0, %v1047_v20  ;;  %887 = vst.msk [vmem:[%s2255_s7 + $0x58] sm:$0xff] %vm320_vm0, %v862_v31  ;;  %v919_v34 = vadd.f32 %v903_v9, %v862_v31  ;;  %v967_v35 = vmul.f32 %v862_v31, %v862_v31  ;;  %v982_v37 = vadd.f32 %v966_v30, %v950_v25  ;;  %v954_v25 = vld [vmem:[#allocation3 + $0x70] sm:$0xff]  ;;  %v907_v31 = vld [vmem:[#allocation2 + $0x78] sm:$0xff] }
 0x202   : >> { %v654_v40 = vadd.f32 %v2329_v19, %v519_v12  ;;  %1127 = vst.msk [vmem:[#allocation3 + $0x38] sm:$0xff] %vm320_vm0, %v1111_v33  ;;  %v863_v44 = vsel %vm799_vm10, %v761_v15, %v831_v36  ;;  %v656_v45 = vadd.f32 %v2332_v22, %v519_v12  ;;  %v767_v48 = vadd.f32 %v2334_v23, %v519_v12  ;;  %v524_v22 = vpop.permute.xlu1 %523  ;;  %v953_v15 = vld [vmem:[#allocation3 + $0x68] sm:$0xff] }
 0x203   : >> { %935 = vst.msk [vmem:[#allocation2 + $0x58] sm:$0xff] %vm320_vm0, %v919_v34  ;;  %v983_v41 = vadd.f32 %v967_v35, %v951_v32  ;;  %1560 = vst [vmem:[%s2255_s7 + $0xd0] sm:$0xff] %v863_v44  ;;  %v1050_v49 = vadd.f32 %v918_v29, %v863_v44  ;;  %v1098_v51 = vmul.f32 %v863_v44, %v863_v44 }
 0x204   : >> { %v864_v52 = vsel %vm800_vm11, %v763_v16, %v832_v38  ;;  %vm801_vm12 = vcmp.gt.f32.partialorder %v654_v40, 0.0  ;;  %v1033_v53 = vld [vmem:[#allocation2 + $0x48] sm:$0xff]  ;;  %v833_v54 = vmul.f32 0.25, %v654_v40  ;;  %vm802_vm13 = vcmp.gt.f32.partialorder %v656_v45, 0.0 }
 0x205   : >> { %999 = vst.msk [vmem:[#allocation3 + $0x58] sm:$0xff] %vm320_vm0, %v983_v41  ;;  %1561 = vst.msk [vmem:[%s2255_s7 + $0xd8] sm:$0xff] %vm320_vm0, %v864_v52  ;;  %v1099_v19 = vmul.f32 %v864_v52, %v864_v52  ;;  %v834_v57 = vmul.f32 0.25, %v656_v45  ;;  %v1049_v59 = vadd.f32 %v1033_v53, %v860_v21  ;;  %v1114_v23 = vadd.f32 %v1098_v51, %v982_v37 }
 0x206   : >> { %1066 = vst [vmem:[#allocation2 + $0x50] sm:$0xff] %v1050_v49  ;;  %vm803_vm14 = vcmp.gt.f32.partialorder %v767_v48, 0.0  ;;  %v835_v60 = vmul.f32 0.25, %v767_v48  ;;  %v1081_v63 = vld [vmem:[#allocation3 + $0x48] sm:$0xff]  ;;  %v865_v42 = vsel %vm801_vm12, %v654_v40, %v833_v54  ;;  %v769_v1 = vadd.f32 %v2336_v28, %v519_v12  ;;  %v955_v12 = vld [vmem:[#allocation3 + $0x78] sm:$0xff] }
 0x207   : >> { %v866_v0 = vsel %vm802_vm13, %v656_v45, %v834_v57  ;;  %v660_v4 = vadd.f32 %v2345_v39, %v524_v22  ;;  %1065 = vst.msk [vmem:[#allocation2 + $0x48] sm:$0xff] %vm320_vm0, %v1049_v59  ;;  %v1113_v5 = vadd.f32 %v1097_v27, %v1081_v63  ;;  %1130 = vst [vmem:[#allocation3 + $0x50] sm:$0xff] %v1114_v23  ;;  %v1140_v57 = vld [vmem:[#allocation2 + $0x20] sm:$0xff] (%p354_p6)  ;;  %v1137_v23 = vld [vmem:[#allocation2 + $0x8] sm:$0xff] (%p354_p6) }
 0x208   : >> { %888 = vst [vmem:[%s2255_s7 + $0x60] sm:$0xff] %v865_v42  ;;  %v920_v6 = vadd.f32 %v904_v56, %v865_v42  ;;  %v968_v10 = vmul.f32 %v865_v42, %v865_v42  ;;  %889 = vst.msk [vmem:[%s2255_s7 + $0x68] sm:$0xff] %vm320_vm0, %v866_v0  ;;  %v921_v13 = vadd.f32 %v905_v58, %v866_v0  ;;  %vm804_vm15 = vcmp.gt.f32.partialorder %v769_v1, 0.0  ;;  %v1141_v58 = vld [vmem:[#allocation2 + $0x28] sm:$0xff] (%p354_p6)  ;;  %v1143_v63 = vld [vmem:[#allocation2 + $0x38] sm:$0xff] (%p354_p6) }
 0x209   : >> { %v969_v16 = vmul.f32 %v866_v0, %v866_v0  ;;  %v867_v17 = vsel %vm803_vm14, %v767_v48, %v835_v60  ;;  %v836_v8 = vmul.f32 0.25, %v769_v1  ;;  %1129 = vst.msk [vmem:[#allocation3 + $0x48] sm:$0xff] %vm320_vm0, %v1113_v5  ;;  %vm805_vm1 = vcmp.gt.f32.partialorder %v660_v4, 0.0  ;;  %v1142_v60 = vld [vmem:[#allocation2 + $0x30] sm:$0xff] (%p354_p6) }
 0x20a   : >> { %v1035_v28 = vld [vmem:[#allocation2 + $0x58] sm:$0xff]  ;;  %v984_v39 = vadd.f32 %v968_v10, %v952_v43  ;;  %937 = vst.msk [vmem:[#allocation2 + $0x68] sm:$0xff] %vm320_vm0, %v921_v13  ;;  %1562 = vst [vmem:[%s2255_s7 + $0xe0] sm:$0xff] %v867_v17  ;;  %v1052_v18 = vadd.f32 %v920_v6, %v867_v17  ;;  %v1100_v11 = vmul.f32 %v867_v17, %v867_v17  ;;  %v837_v2 = vmul.f32 0.25, %v660_v4 }
 0x20b   : >> { %v1051_v50 = vadd.f32 %v1035_v28, %v864_v52  ;;  %v985_v61 = vadd.f32 %v969_v16, %v953_v15  ;;  %v868_v62 = vsel %vm804_vm15, %v769_v1, %v836_v8  ;;  %v662_v9 = vadd.f32 %v2351_v46, %v524_v22  ;;  %v1138_v1 = vld [vmem:[#allocation2 + $0x10] sm:$0xff] (%p354_p6)  ;;  %v1144_v28 = vld [vmem:[#allocation2 + $0x40] sm:$0xff] (%p354_p6) }
 0x20c   : >> { %v1083_v3 = vld [vmem:[#allocation3 + $0x58] sm:$0xff]  ;;  %1068 = vst [vmem:[#allocation2 + $0x60] sm:$0xff] %v1052_v18  ;;  %v1116_v14 = vadd.f32 %v1100_v11, %v984_v39  ;;  %1563 = vst.msk [vmem:[%s2255_s7 + $0xe8] sm:$0xff] %vm320_vm0, %v868_v62  ;;  %v773_v20 = vadd.f32 %v2353_v47, %v524_v22  ;;  %v869_v24 = vsel %vm805_vm1, %v660_v4, %v837_v2  ;;  %v1160_v59 = vsel (%p354_p6), %vm320_vm0, %v1141_v58, 0.0 }
 0x20d   : >> { %1067 = vst.msk [vmem:[#allocation2 + $0x58] sm:$0xff] %vm320_vm0, %v1051_v50  ;;  %v1115_v21 = vadd.f32 %v1099_v19, %v1083_v3  ;;  %1001 = vst.msk [vmem:[#allocation3 + $0x68] sm:$0xff] %vm320_vm0, %v985_v61  ;;  %v775_v26 = vadd.f32 %v2361_v55, %v524_v22  ;;  %v922_v27 = vadd.f32 %v906_v7, %v869_v24  ;;  %vm806_vm2 = vcmp.gt.f32.partialorder %v662_v9, 0.0  ;;  %v1136_v22 = vld [vmem:[#allocation2] sm:$0xff] (%p354_p6)  ;;  %v1139_v4 = vld [vmem:[#allocation2 + $0x18] sm:$0xff] (%p354_p6) }
 0x20e   : >> { %1132 = vst [vmem:[#allocation3 + $0x60] sm:$0xff] %v1116_v14  ;;  %890 = vst [vmem:[%s2255_s7 + $0x70] sm:$0xff] %v869_v24  ;;  %v970_v29 = vmul.f32 %v869_v24, %v869_v24  ;;  %v838_v30 = vmul.f32 0.25, %v662_v9  ;;  %vm807_vm3 = vcmp.gt.f32.partialorder %v773_v20, 0.0  ;;  %v839_v46 = vmul.f32 0.25, %v773_v20  ;;  %v1145_v13 = vld [vmem:[#allocation2 + $0x48] sm:$0xff] (%p354_p6) }
 0x20f   : >> { %1131 = vst.msk [vmem:[#allocation3 + $0x58] sm:$0xff] %vm320_vm0, %v1115_v21  ;;  %vm808_vm4 = vcmp.gt.f32.partialorder %v775_v26, 0.0  ;;  %v840_v47 = vmul.f32 0.25, %v775_v26  ;;  %v1101_v44 = vmul.f32 %v868_v62, %v868_v62  ;;  %v1161_v42 = vadd.f32 (%p354_p6), %v1160_v59, %v1140_v57  ;;  %v1146_v17 = vld [vmem:[#allocation2 + $0x50] sm:$0xff] (%p354_p6)  ;;  %v1196_v14 = vld [vmem:[#allocation3 + $0x18] sm:$0xff] (%p354_p6) }
 0x210   : >> { %v986_v32 = vadd.f32 %v970_v29, %v954_v25  ;;  %v870_v33 = vsel %vm806_vm2, %v662_v9, %v838_v30  ;;  %v871_v36 = vsel %vm807_vm3, %v773_v20, %v839_v46  ;;  %v1152_v43 = vsel (%p354_p6), %vm320_vm0, %v1137_v23, 0.0  ;;  %v1194_v9 = vld [vmem:[#allocation3 + $0x8] sm:$0xff] (%p354_p6)  ;;  %v1195_v24 = vld [vmem:[#allocation3 + $0x10] sm:$0xff] (%p354_p6)  ;;  %v1200_v29 = vld [vmem:[#allocation3 + $0x38] sm:$0xff] (%p354_p6) }
 0x211   : >> { %v1037_v55 = vld [vmem:[#allocation2 + $0x68] sm:$0xff]  ;;  %891 = vst.msk [vmem:[%s2255_s7 + $0x78] sm:$0xff] %vm320_vm0, %v870_v33  ;;  %v923_v34 = vadd.f32 %v907_v31, %v870_v33  ;;  %v971_v35 = vmul.f32 %v870_v33, %v870_v33  ;;  %v872_v37 = vsel %vm808_vm4, %v775_v26, %v840_v47  ;;  %1564 = vst [vmem:[%s2255_s7 + $0xf0] sm:$0xff] %v871_v36  ;;  %v1164_v0 = vsel (%p354_p6), %vm320_vm0, %v1143_v63, 0.0  ;;  %v1193_v26 = vld [vmem:[#allocation3] sm:$0xff] (%p354_p6) }
 0x212   : >> { %v1053_v38 = vadd.f32 %v1037_v55, %v868_v62  ;;  %v1054_v40 = vadd.f32 %v922_v27, %v871_v36  ;;  %v1102_v41 = vmul.f32 %v871_v36, %v871_v36  ;;  %1565 = vst.msk [vmem:[%s2255_s7 + $0xf8] sm:$0xff] %vm320_vm0, %v872_v37  ;;  %v1103_v19 = vmul.f32 %v872_v37, %v872_v37  ;;  %v1198_v30 = vld [vmem:[#allocation3 + $0x28] sm:$0xff] (%p354_p6)  ;;  %v1199_v47 = vld [vmem:[#allocation3 + $0x30] sm:$0xff] (%p354_p6)  ;;  %v1197_v33 = vld [vmem:[#allocation3 + $0x20] sm:$0xff] (%p354_p6) }
 0x213   : >> { %939 = vst.msk [vmem:[#allocation2 + $0x78] sm:$0xff] %vm320_vm0, %v923_v34  ;;  %v987_v45 = vadd.f32 %v971_v35, %v955_v12  ;;  %v1153_v5 = vadd.f32 (%p354_p6), %v1152_v43, %v1136_v22  ;;  %v1156_v6 = vsel (%p354_p6), %vm320_vm0, %v1139_v4, 0.0  ;;  %1162 = vadd.xlane.f32.xlu1 (%p354_p6), %v1161_v42  ;;  %v1165_v15 = vadd.f32 (%p354_p6), %v1164_v0, %v1142_v60  ;;  %v1148_v7 = vld [vmem:[#allocation2 + $0x60] sm:$0xff] (%p354_p6)  ;;  %v1202_v34 = vld [vmem:[#allocation3 + $0x48] sm:$0xff] (%p354_p6) }
 0x214   : >> { %1069 = vst.msk [vmem:[#allocation2 + $0x68] sm:$0xff] %vm320_vm0, %v1053_v38  ;;  %v1085_v48 = vld [vmem:[#allocation3 + $0x68] sm:$0xff]  ;;  %1070 = vst [vmem:[#allocation2 + $0x70] sm:$0xff] %v1054_v40  ;;  %v1118_v49 = vadd.f32 %v1102_v41, %v986_v32  ;;  %v1147_v10 = vld [vmem:[#allocation2 + $0x58] sm:$0xff] (%p354_p6)  ;;  %v1157_v16 = vadd.f32 (%p354_p6), %v1156_v6, %v1138_v1  ;;  %v1168_v39 = vsel (%p354_p6), %vm320_vm0, %v1145_v13, 0.0  ;;  %v1213_v25 = vsel (%p354_p6), %vm320_vm0, %v1196_v14, 0.0 }
 0x215   : >> { %v1117_v51 = vadd.f32 %v1101_v44, %v1085_v48  ;;  %1003 = vst.msk [vmem:[#allocation3 + $0x78] sm:$0xff] %vm320_vm0, %v987_v45  ;;  %1154 = vadd.xlane.f32.xlu0 (%p354_p6), %v1153_v5  ;;  %v1172_v8 = vsel (%p354_p6), %vm320_vm0, %v1147_v10, 0.0  ;;  %v1169_v61 = vadd.f32 (%p354_p6), %v1168_v39, %v1144_v28  ;;  %v1209_v27 = vsel (%p354_p6), %vm320_vm0, %v1194_v9, 0.0  ;;  %v1201_v40 = vld [vmem:[#allocation3 + $0x40] sm:$0xff] (%p354_p6) }
 0x216   : >> { %1134 = vst [vmem:[#allocation3 + $0x70] sm:$0xff] %v1118_v49  ;;  %v1173_v50 = vadd.f32 (%p354_p6), %v1172_v8, %v1146_v17  ;;  %v1214_v31 = vadd.f32 (%p354_p6), %v1213_v25, %v1195_v24  ;;  %v1210_v46 = vadd.f32 (%p354_p6), %v1209_v27, %v1193_v26  ;;  %v1221_v32 = vsel (%p354_p6), %vm320_vm0, %v1200_v29, 0.0  ;;  %v1204_v55 = vld [vmem:[#allocation3 + $0x58] sm:$0xff] (%p354_p6) }
 0x217   : >> { %1133 = vst.msk [vmem:[#allocation3 + $0x68] sm:$0xff] %vm320_vm0, %v1117_v51  ;;  %1166 = vadd.xlane.f32.xlu1 (%p354_p6), %v1165_v15  ;;  %v1217_v12 = vsel (%p354_p6), %vm320_vm0, %v1198_v30, 0.0  ;;  %v1222_v35 = vadd.f32 (%p354_p6), %v1221_v32, %v1199_v47  ;;  %v1229_v38 = vsel (%p354_p6), %vm320_vm0, %v1204_v55, 0.0  ;;  %v1225_v41 = vsel (%p354_p6), %vm320_vm0, %v1202_v34, 0.0 }
 0x218   : > { %v1218_v36 = vadd.f32 (%p354_p6), %v1217_v12, %v1197_v33  ;;  %v1226_v49 = vadd.f32 (%p354_p6), %v1225_v41, %v1201_v40 }
 0x219   : > { %356 = sbr.rel (!%p354_p6) target bundleno = 113 (0x71), region = 118  ;;  %1158 = vadd.xlane.f32.xlu0 (%p354_p6), %v1157_v16 }
 0x21a   : >> { %v1039_v52 = vld [vmem:[#allocation2 + $0x78] sm:$0xff] }
 0x21b   : >> { %v1055_v53 = vadd.f32 %v1039_v52, %v872_v37  ;;  %v1149_v11 = vld [vmem:[#allocation2 + $0x68] sm:$0xff] (%p354_p6)  ;;  %v1150_v62 = vld [vmem:[#allocation2 + $0x70] sm:$0xff] (%p354_p6)  ;;  %1174 = vadd.xlane.f32.xlu1 (%p354_p6), %v1173_v50 }
 0x21c   : >> { %v1087_v54 = vld [vmem:[#allocation3 + $0x78] sm:$0xff]  ;;  %v1176_v3 = vsel (%p354_p6), %vm320_vm0, %v1149_v11, 0.0  ;;  %v1203_v37 = vld [vmem:[#allocation3 + $0x50] sm:$0xff] (%p354_p6) }
 0x21d   : >> { %1071 = vst.msk [vmem:[#allocation2 + $0x78] sm:$0xff] %vm320_vm0, %v1055_v53  ;;  %v1119_v56 = vadd.f32 %v1103_v19, %v1087_v54  ;;  %1170 = vadd.xlane.f32.xlu0 (%p354_p6), %v1169_v61  ;;  %v1177_v21 = vadd.f32 (%p354_p6), %v1176_v3, %v1148_v7  ;;  %v1230_v48 = vadd.f32 (%p354_p6), %v1229_v38, %v1203_v37  ;;  %v1207_v51 = vld [vmem:[#allocation3 + $0x70] sm:$0xff] (%p354_p6)  ;;  %v1205_v53 = vld [vmem:[#allocation3 + $0x60] sm:$0xff] (%p354_p6) }
 0x21e   : > { %v1206_v45 = vld [vmem:[#allocation3 + $0x68] sm:$0xff] (%p354_p6) }
 0x21f   : >> { %1135 = vst.msk [vmem:[#allocation3 + $0x78] sm:$0xff] %vm320_vm0, %v1119_v56  ;;  %v1233_v19 = vsel (%p354_p6), %vm320_vm0, %v1206_v45, 0.0 }
 0x220   : > { %v1234_v56 = vadd.f32 %v1233_v19, %v1205_v53 }
 0x221   : > { %1178 = vadd.xlane.f32.xlu0 %v1177_v21 }
 0x224   : > { %v1151_v18 = vld [vmem:[#allocation2 + $0x78] sm:$0xff] }
 0x225   : > { %v1180_v2 = vsel %vm320_vm0, %v1151_v18, 0.0  ;;  %1211 = vadd.xlane.f32.xlu0 %v1210_v46 }
 0x226   : > { %v1181_v20 = vadd.f32 %v1180_v2, %v1150_v62  ;;  %v1208_v44 = vld [vmem:[#allocation3 + $0x78] sm:$0xff] }
 0x227   : > { %v1237_v52 = vsel %vm320_vm0, %v1208_v44, 0.0 }
 0x228   : > { %1182 = vadd.xlane.f32.xlu1 %v1181_v20  ;;  %v1238_v54 = vadd.f32 %v1237_v52, %v1207_v51 }
 0x229   : > { %1219 = vadd.xlane.f32.xlu0 %v1218_v36 }
 0x22c   : > { %1215 = vadd.xlane.f32.xlu1 %v1214_v31 }
 0x22d   : > { %1227 = vadd.xlane.f32.xlu0 %v1226_v49 }
 0x230   : > { %1223 = vadd.xlane.f32.xlu1 %v1222_v35 }
 0x231   : > { %1235 = vadd.xlane.f32.xlu0 %v1234_v56 }
 0x234   : > { %1231 = vadd.xlane.f32.xlu1 %v1230_v48 }
 0x238   : > { %1239 = vadd.xlane.f32.xlu1 %v1238_v54 }
 0x239   : > { %1804 = shalt.err (!%p1801_p1)
}
 0x23a   : > { %s1805_s8 = scalar_lea.hbm %s2451_s28, 520192  ;;  %s1809_s7 = scalar_lea.hbm %s2537_s3, 1040384 }
 0x23b   : > { %p1806_p2 = scmp.ne.s32.totalorder %s2451_s28, %s1805_s8  ;;  %p1810_p13 = scmp.lt.u32.totalorder %s2451_s28, %s2537_s3 }
 0x23c   : > { %p1811_p4 = scmp.lt.u32.totalorder %s1809_s7, %s1805_s8  ;;  %p1813_p8 = scmp.lt.u32.totalorder %s1805_s8, %s2451_s28 }
 0x23d   : > { %p1807_p3 = pnand %p1806_p2, %p2027_p10 }
 0x23e   : > { %p1812_p6 = por %p1811_p4, %p1810_p13 }
 0x23f   : > { %p1808_p7 = pneg %p1807_p3 }
 0x240   : > { %p1814_p12 = por %p1813_p8, %p1812_p6 }
 0x242   : > { %p1815_p11 = pnand %p1814_p12, %p1808_p7 }
 0x244   : > { %1818 = shalt.err (!%p1815_p11)
}
 0x245   : > { %s1899_s30 = smov 256   ;;  %s1900_s6 = smov 16   ;;  %vm1184_vm0 = vcmask 7168  }
 0x246   : > { %1620 = dma.vmem_to_hbm [thread:$0]  (%p2027_p10), %s2453_s12, 520192, %s2451_s28, %s1250_s25, %s1899_s30, %s1899_s30, %s1900_s6  }
 0x2a0   : > { %v1163_v57 = vpop.xlane.xlu1 %1162 }
 0x2a1   : > { %1187 = vst.msk [vmem:[%s2121_s10 + $0x10] sm:$0xff] %vm1184_vm0, %v1163_v57 }
 0x2a2   : > { %v1155_v58 = vpop.xlane.xlu0 %1154 }
 0x2a3   : > { %1185 = vst.msk [vmem:[%s2121_s10] sm:$0xff] %vm1184_vm0, %v1155_v58 }
 0x2a4   : > { %v1167_v22 = vpop.xlane.xlu1 %1166 }
 0x2a5   : > { %1188 = vst.msk [vmem:[%s2121_s10 + $0x18] sm:$0xff] %vm1184_vm0, %v1167_v22 }
 0x2a6   : > { %v1159_v59 = vpop.xlane.xlu0 %1158 }
 0x2a7   : > { %1186 = vst.msk [vmem:[%s2121_s10 + $0x8] sm:$0xff] %vm1184_vm0, %v1159_v59 }
 0x2a8   : > { %v1175_v23 = vpop.xlane.xlu1 %1174 }
 0x2a9   : > { %1190 = vst.msk [vmem:[%s2121_s10 + $0x28] sm:$0xff] %vm1184_vm0, %v1175_v23 }
 0x2aa   : > { %v1171_v60 = vpop.xlane.xlu0 %1170 }
 0x2ab   : > { %1189 = vst.msk [vmem:[%s2121_s10 + $0x20] sm:$0xff] %vm1184_vm0, %v1171_v60 }
 0x2ae   : > { %v1179_v42 = vpop.xlane.xlu0 %1178 }
 0x2af   : > { %1191 = vst.msk [vmem:[%s2121_s10 + $0x30] sm:$0xff] %vm1184_vm0, %v1179_v42 }
 0x2b2   : > { %v1212_v0 = vpop.xlane.xlu0 %1211 }
 0x2b3   : > { %1241 = vst.msk [vmem:[%s2126_s16] sm:$0xff] %vm1184_vm0, %v1212_v0 }
 0x2b5   : > { %v1183_v63 = vpop.xlane.xlu1 %1182 }
 0x2b6   : > { %1192 = vst.msk [vmem:[%s2121_s10 + $0x38] sm:$0xff] %vm1184_vm0, %v1183_v63  ;;  %v1220_v4 = vpop.xlane.xlu0 %1219 }
 0x2b7   : > { %1243 = vst.msk [vmem:[%s2126_s16 + $0x10] sm:$0xff] %vm1184_vm0, %v1220_v4 }
 0x2b9   : > { %v1216_v43 = vpop.xlane.xlu1 %1215 }
 0x2ba   : > { %1242 = vst.msk [vmem:[%s2126_s16 + $0x8] sm:$0xff] %vm1184_vm0, %v1216_v43  ;;  %v1228_v6 = vpop.xlane.xlu0 %1227 }
 0x2bb   : > { %1245 = vst.msk [vmem:[%s2126_s16 + $0x20] sm:$0xff] %vm1184_vm0, %v1228_v6 }
 0x2bd   : > { %v1224_v1 = vpop.xlane.xlu1 %1223 }
 0x2be   : > { %1244 = vst.msk [vmem:[%s2126_s16 + $0x18] sm:$0xff] %vm1184_vm0, %v1224_v1  ;;  %v1236_v13 = vpop.xlane.xlu0 %1235 }
 0x2bf   : > { %1247 = vst.msk [vmem:[%s2126_s16 + $0x30] sm:$0xff] %vm1184_vm0, %v1236_v13 }
 0x2c1   : > { %v1232_v5 = vpop.xlane.xlu1 %1231 }
 0x2c2   : > { %1246 = vst.msk [vmem:[%s2126_s16 + $0x28] sm:$0xff] %vm1184_vm0, %v1232_v5 }
 0x2c5   : > { %v1240_v10 = vpop.xlane.xlu1 %1239 }
 0x2c6   : > { %1248 = vst.msk [vmem:[%s2126_s16 + $0x38] sm:$0xff] %vm1184_vm0, %v1240_v10 }
 0x2c7 PF: > { %s1305_s13 = sand.u32 1, %s1861_s18   ;;  %p2559_p10 = scmp.ne.s32.totalorder %s2548_s29, 0 }
 0x2c8   : > { %p2560_p0 = scmp.ge.s32.totalorder %s1881_s23, 2  ;;  %s1306_s17 = scalar_lea.sflag [#allocation6], %s1305_s13 }
 0x2ca   : > { %p1631_p5 = pnand %p2560_p0, %p2559_p10 }
 0x2cc   : > { %1856 = dma.done.wait (!%p1631_p5), %s1306_s17, 520192  }
 0x2cd   : > { %1858 = vsyncadd (!%p1631_p5), %s1306_s17, 4294447104  ;;  %s23_s23 = sadd.s32 1, %s1881_s23   ;;  %s2561_s18 = smov %s1865_s19 }
 0x2ce   : > { %p20_p9 = scmp.ge.s32.totalorder %s23_s23, 4   ;;  %s2562_s19 = smov %s1869_s20 }
 0x2cf   : > { %s2563_s20 = smov %s2036_s15  ;;  %s2564_s21 = smov %s1877_s22 }
 0x2d0   : > { %s2565_s22 = smov %s2567_s9  ;;  %22 = sbr.rel (!%p20_p9) target bundleno = 9 (0x9), region = 129 }
 0x2d7   :  { %1335 = vsyncpa [#allocation5], 1 }
 0x2d8   :  { %1337 = vsyncpa [#allocation5 + $0x1], 1 }
 0x2d9   :  { %1338 = vsyncpa [#allocation8], 1 }
 0x2da   :  { %1339 = vsyncpa [#allocation6], 1 }
 0x2db   :  { %1341 = vsyncpa [#allocation6 + $0x1], 1 }

</bundles_post_ra>
